<compile_context>
chip_gen: v5e
topology: v5e:2x2
jax: 0.10.0
libtpu: 0.0.40
codegen_flags: <defaults>
</compile_context>

<pallas_src>
import functools

import jax
import jax.numpy as jnp
import numpy as np
from jax.experimental import pallas as pl
from jax.experimental.pallas import tpu as pltpu


# ---------------------------------------------------------------------------
# Pallas kernel: embedding + PE + one transformer block for one batch element.
# ---------------------------------------------------------------------------
def _layer_norm(h, gamma, beta, eps=1e-5):
    mu = jnp.mean(h, axis=-1, keepdims=True)
    var = jnp.mean((h - mu) ** 2, axis=-1, keepdims=True)
    return (h - mu) * jax.lax.rsqrt(var + eps) * gamma + beta


def _encoder_block_kernel(num_heads,
                          tok_ref, pe_ref, emb_ref,
                          wqkv_ref, bqkv_ref, wo_ref, bo_ref,
                          g1_ref, be1_ref, w1_ref, bf1_ref,
                          w2_ref, bf2_ref, g2_ref, be2_ref,
                          o_ref):
    S, E = pe_ref.shape
    V = emb_ref.shape[0]
    H = num_heads
    Dh = E // H
    bf16 = jnp.bfloat16

    # --- fused embedding gather (one-hot matmul, MXU) + positional enc. ---
    tok = tok_ref[0]                                          # (S, 1) int32
    vocab_iota = jax.lax.broadcasted_iota(jnp.int32, (S, V), 1)
    onehot = jnp.where(vocab_iota == tok, 1.0, 0.0).astype(bf16)   # (S, V)
    x = jnp.dot(onehot, emb_ref[...],
                preferred_element_type=jnp.float32) + pe_ref[...]  # (S, E) f32

    # --- fused QKV projection: one big matmul ------------------------------
    qkv = jnp.dot(x.astype(bf16), wqkv_ref[...],
                  preferred_element_type=jnp.float32) + bqkv_ref[...]  # (S,3E)

    # heads batched along the LEADING axis (cheap concat, no lane relayout
    # in the attention math itself): (H, S, Dh)
    q = jnp.stack([qkv[:, h * Dh:(h + 1) * Dh] for h in range(H)], axis=0)
    k = jnp.stack([qkv[:, E + h * Dh:E + (h + 1) * Dh] for h in range(H)],
                  axis=0)
    v = jnp.stack([qkv[:, 2 * E + h * Dh:2 * E + (h + 1) * Dh]
                   for h in range(H)], axis=0)

    # --- batched attention: single score einsum + single softmax -----------
    scale = 1.0 / float(np.sqrt(Dh))
    s = jnp.einsum('hqd,hkd->hqk', q.astype(bf16), k.astype(bf16),
                   preferred_element_type=jnp.float32) * scale      # (H,S,S)
    m = jnp.max(s, axis=-1, keepdims=True)
    p = jnp.exp(s - m)
    denom = jnp.sum(p, axis=-1, keepdims=True)
    p = p * pl.reciprocal(denom, approx=True)                       # EUP slot
    ctx = jnp.einsum('hqk,hkd->hqd', p.astype(bf16), v.astype(bf16),
                     preferred_element_type=jnp.float32)            # (H,S,Dh)

    # --- output projection folded over heads (no lane-axis concatenate) ----
    att = jnp.zeros((S, E), jnp.float32)
    for h in range(H):                                   # H=4, static unroll
        att = att + jnp.dot(ctx[h].astype(bf16),
                            wo_ref[h * Dh:(h + 1) * Dh, :],
                            preferred_element_type=jnp.float32)
    att = att + bo_ref[...]

    # --- residual + LayerNorm 1 --------------------------------------------
    h1 = _layer_norm(x + att, g1_ref[...], be1_ref[...])

    # --- feed-forward (4x expansion, ReLU), bf16 MXU operands ---------------
    f = jnp.dot(h1.astype(bf16), w1_ref[...],
                preferred_element_type=jnp.float32)
    f = jnp.maximum(f + bf1_ref[...], 0.0)
    f = jnp.dot(f.astype(bf16), w2_ref[...],
                preferred_element_type=jnp.float32)
    f = f + bf2_ref[...]

    # --- residual + LayerNorm 2 --------------------------------------------
    o_ref[0] = _layer_norm(h1 + f, g2_ref[...], be2_ref[...])


def encoder_forward_pallas(tokens, params, num_heads):
    """tokens: (B, S) int32 -> (B, S, E) f32. Grid over batch (parallel)."""
    B, S = tokens.shape
    E = params["emb"].shape[1]
    pe = params["pe"]
    tok3 = tokens.reshape(B, S, 1).astype(jnp.int32)

    bf16 = jnp.bfloat16
    weights = [
        pe,
        params["emb"].astype(bf16),
        params["wqkv"].astype(bf16), params["bqkv"],
        params["wo"].astype(bf16), params["bo"],
        params["g1"], params["be1"],
        params["w1"].astype(bf16), params["bf1"],
        params["w2"].astype(bf16), params["bf2"],
        params["g2"], params["be2"],
    ]

    def full_spec(a):
        nd = a.ndim
        return pl.BlockSpec(a.shape, lambda b, _nd=nd: (0,) * _nd)

    kernel = functools.partial(_encoder_block_kernel, num_heads)

    # TODO(synk): at realistic sizes (E>=1024, S>=1024), tile the FFN over S
    # and the 4E contraction with a VMEM accumulator instead of keeping all
    # weights/activations resident (v7x VMEM is 64 MiB).
    return pl.pallas_call(
        kernel,
        out_shape=jax.ShapeDtypeStruct((B, S, E), jnp.float32),
        grid_spec=pltpu.PrefetchScalarGridSpec(
            num_scalar_prefetch=0,
            grid=(B,),
            in_specs=[pl.BlockSpec((1, S, 1), lambda b: (b, 0, 0))]
                     + [full_spec(w) for w in weights],
            out_specs=pl.BlockSpec((1, S, E), lambda b: (b, 0, 0)),
        ),
        compiler_params=pltpu.CompilerParams(
            dimension_semantics=("parallel",)),
    )(tok3, *weights)


# ---------------------------------------------------------------------------
# Sinusoidal positional encoding (computed once, passed in params).
# ---------------------------------------------------------------------------
def sinusoidal_pe(seq_len, embed_size):
    pos = np.arange(seq_len)[:, None].astype(np.float32)
    i = np.arange(embed_size // 2)[None, :].astype(np.float32)
    div = np.power(10000.0, 2.0 * i / embed_size)
    pe = np.zeros((seq_len, embed_size), dtype=np.float32)
    pe[:, 0::2] = np.sin(pos / div)
    pe[:, 1::2] = np.cos(pos / div)
    return jnp.asarray(pe)


# ---------------------------------------------------------------------------
# Pure-JAX f32 reference for correctness checking (same math, no Pallas).
# ---------------------------------------------------------------------------
def encoder_reference(tokens, params, num_heads):
    emb = jnp.take(params["emb"], tokens, axis=0)
    x = emb + params["pe"][None]
    B, S, E = x.shape
    H, Dh = num_heads, E // num_heads
    qkv = x @ params["wqkv"] + params["bqkv"]
    q, k, v = qkv[..., :E], qkv[..., E:2 * E], qkv[..., 2 * E:]
    q = q.reshape(B, S, H, Dh).transpose(0, 2, 1, 3)
    k = k.reshape(B, S, H, Dh).transpose(0, 2, 1, 3)
    v = v.reshape(B, S, H, Dh).transpose(0, 2, 1, 3)
    s = jnp.einsum("bhqd,bhkd->bhqk", q, k) / jnp.sqrt(jnp.float32(Dh))
    p = jax.nn.softmax(s, axis=-1)
    att = jnp.einsum("bhqk,bhkd->bhqd", p, v).transpose(0, 2, 1, 3).reshape(B, S, E)
    att = att @ params["wo"] + params["bo"]

    def ln(h, g, b, eps=1e-5):
        mu = jnp.mean(h, -1, keepdims=True)
        var = jnp.mean((h - mu) ** 2, -1, keepdims=True)
        return (h - mu) * jax.lax.rsqrt(var + eps) * g + b

    h1 = ln(x + att, params["g1"], params["be1"])
    f = jnp.maximum(h1 @ params["w1"] + params["bf1"], 0.0) @ params["w2"] + params["bf2"]
    return ln(h1 + f, params["g2"], params["be2"])


def init_params(key, ntokens, embed_size):
    E = embed_size
    ks = jax.random.split(key, 6)
    std = 0.02
    return {
        "emb":  jax.random.normal(ks[0], (ntokens, E), jnp.float32) * std,
        "wqkv": jax.random.normal(ks[1], (E, 3 * E), jnp.float32) * std,
        "bqkv": jnp.zeros((1, 3 * E), jnp.float32),
        "wo":   jax.random.normal(ks[2], (E, E), jnp.float32) * std,
        "bo":   jnp.zeros((1, E), jnp.float32),
        "g1":   jnp.ones((1, E), jnp.float32),
        "be1":  jnp.zeros((1, E), jnp.float32),
        "w1":   jax.random.normal(ks[3], (E, 4 * E), jnp.float32) * std,
        "bf1":  jnp.zeros((1, 4 * E), jnp.float32),
        "w2":   jax.random.normal(ks[4], (4 * E, E), jnp.float32) * std,
        "bf2":  jnp.zeros((1, E), jnp.float32),
        "g2":   jnp.ones((1, E), jnp.float32),
        "be2":  jnp.zeros((1, E), jnp.float32),
    }


if __name__ == "__main__":
    ntokens, embed_size, seq_len, attn_heads = 32, 64, 16, 4
    B = 2

    key = jax.random.PRNGKey(0)
    k_param, k_tok = jax.random.split(key)
    params = init_params(k_param, ntokens, embed_size)
    params["pe"] = sinusoidal_pe(seq_len, embed_size)
    tokens = jax.random.randint(k_tok, (B, seq_len), 0, ntokens, dtype=jnp.int32)

    out = jax.block_until_ready(encoder_forward_pallas(tokens, params, attn_heads))
    ref = jax.block_until_ready(encoder_reference(tokens, params, attn_heads))

    assert out.shape == (B, seq_len, embed_size)
    # bf16 MXU operands in the kernel vs f32 reference -> relaxed tolerance.
    np.testing.assert_allclose(np.asarray(out), np.asarray(ref),
                               rtol=2e-2, atol=2e-2)

    print("KERNEL_OK")
</pallas_src>

<mosaic_0001>
module attributes {stable_mosaic.version = 11 : i64} {
  func.func @_encoder_block_kernel(%arg0: i32, %arg1: memref<1x16x1xi32, #tpu.memory_space<vmem>>, %arg2: memref<16x64xf32, #tpu.memory_space<vmem>>, %arg3: memref<32x64xbf16, #tpu.memory_space<vmem>>, %arg4: memref<64x192xbf16, #tpu.memory_space<vmem>>, %arg5: memref<1x192xf32, #tpu.memory_space<vmem>>, %arg6: memref<64x64xbf16, #tpu.memory_space<vmem>>, %arg7: memref<1x64xf32, #tpu.memory_space<vmem>>, %arg8: memref<1x64xf32, #tpu.memory_space<vmem>>, %arg9: memref<1x64xf32, #tpu.memory_space<vmem>>, %arg10: memref<64x256xbf16, #tpu.memory_space<vmem>>, %arg11: memref<1x256xf32, #tpu.memory_space<vmem>>, %arg12: memref<256x64xbf16, #tpu.memory_space<vmem>>, %arg13: memref<1x64xf32, #tpu.memory_space<vmem>>, %arg14: memref<1x64xf32, #tpu.memory_space<vmem>>, %arg15: memref<1x64xf32, #tpu.memory_space<vmem>>, %arg16: memref<1x16x64xf32, #tpu.memory_space<vmem>>) attributes {dimension_semantics = [#tpu.dimension_semantics<parallel>], iteration_bounds = array<i64: 2>, scalar_prefetch = 0 : i64, scratch_operands = 0 : i64, tpu.core_type = #tpu.core_type<tc>, window_params = [{transform_indices = @transform_0, window_bounds = array<i64: 1, 16, 1>}, {pipeline_mode = #tpu.pipeline_mode<synchronous>, transform_indices = @transform_1, window_bounds = array<i64: 16, 64>}, {pipeline_mode = #tpu.pipeline_mode<synchronous>, transform_indices = @transform_2, window_bounds = array<i64: 32, 64>}, {pipeline_mode = #tpu.pipeline_mode<synchronous>, transform_indices = @transform_3, window_bounds = array<i64: 64, 192>}, {pipeline_mode = #tpu.pipeline_mode<synchronous>, transform_indices = @transform_4, window_bounds = array<i64: 1, 192>}, {pipeline_mode = #tpu.pipeline_mode<synchronous>, transform_indices = @transform_5, window_bounds = array<i64: 64, 64>}, {pipeline_mode = #tpu.pipeline_mode<synchronous>, transform_indices = @transform_6, window_bounds = array<i64: 1, 64>}, {pipeline_mode = #tpu.pipeline_mode<synchronous>, transform_indices = @transform_7, window_bounds = array<i64: 1, 64>}, {pipeline_mode = #tpu.pipeline_mode<synchronous>, transform_indices = @transform_8, window_bounds = array<i64: 1, 64>}, {pipeline_mode = #tpu.pipeline_mode<synchronous>, transform_indices = @transform_9, window_bounds = array<i64: 64, 256>}, {pipeline_mode = #tpu.pipeline_mode<synchronous>, transform_indices = @transform_10, window_bounds = array<i64: 1, 256>}, {pipeline_mode = #tpu.pipeline_mode<synchronous>, transform_indices = @transform_11, window_bounds = array<i64: 256, 64>}, {pipeline_mode = #tpu.pipeline_mode<synchronous>, transform_indices = @transform_12, window_bounds = array<i64: 1, 64>}, {pipeline_mode = #tpu.pipeline_mode<synchronous>, transform_indices = @transform_13, window_bounds = array<i64: 1, 64>}, {pipeline_mode = #tpu.pipeline_mode<synchronous>, transform_indices = @transform_14, window_bounds = array<i64: 1, 64>}, {transform_indices = @transform_15, window_bounds = array<i64: 1, 16, 64>}]} {
    %c0 = arith.constant 0 : index
    %c0_0 = arith.constant 0 : index
    %c0_1 = arith.constant 0 : index
    %0 = vector.load %arg1[%c0, %c0_0, %c0_1] : memref<1x16x1xi32, #tpu.memory_space<vmem>>, vector<1x16x1xi32>
    %1 = vector.shape_cast %0 : vector<1x16x1xi32> to vector<16x1xi32>
    %2 = tpu.iota {dimensions = array<i32: 1>} : vector<16x32xi32>
    %3 = vector.broadcast %1 : vector<16x1xi32> to vector<16x32xi32>
    %4 = arith.cmpi eq, %2, %3 : vector<16x32xi32>
    %cst = arith.constant 1.000000e+00 : f32
    %cst_2 = arith.constant 0.000000e+00 : f32
    %5 = vector.broadcast %cst : f32 to vector<16x32xf32>
    %6 = vector.broadcast %cst_2 : f32 to vector<16x32xf32>
    %7 = arith.select %4, %5, %6 : vector<16x32xi1>, vector<16x32xf32>
    %8 = arith.truncf %7 : vector<16x32xf32> to vector<16x32xbf16>
    %c0_3 = arith.constant 0 : index
    %c0_4 = arith.constant 0 : index
    %9 = vector.load %arg3[%c0_3, %c0_4] : memref<32x64xbf16, #tpu.memory_space<vmem>>, vector<32x64xbf16>
    %cst_5 = arith.constant dense<0.000000e+00> : vector<16x64xf32>
    %10 = tpu.matmul %8, %9, %cst_5 {dimension_numbers = #tpu.dot_dimension_numbers<[1], [0], [0], [1], [0, 0, 1, 1], [], []>} : vector<16x32xbf16>, vector<32x64xbf16>, vector<16x64xf32> -> vector<16x64xf32>
    %c0_6 = arith.constant 0 : index
    %c0_7 = arith.constant 0 : index
    %11 = vector.load %arg2[%c0_6, %c0_7] : memref<16x64xf32, #tpu.memory_space<vmem>>, vector<16x64xf32>
    %12 = arith.addf %10, %11 : vector<16x64xf32>
    %13 = arith.truncf %12 : vector<16x64xf32> to vector<16x64xbf16>
    %c0_8 = arith.constant 0 : index
    %c0_9 = arith.constant 0 : index
    %14 = vector.load %arg4[%c0_8, %c0_9] : memref<64x192xbf16, #tpu.memory_space<vmem>>, vector<64x192xbf16>
    %cst_10 = arith.constant dense<0.000000e+00> : vector<16x192xf32>
    %15 = tpu.matmul %13, %14, %cst_10 {dimension_numbers = #tpu.dot_dimension_numbers<[1], [0], [0], [1], [0, 0, 1, 1], [], []>} : vector<16x64xbf16>, vector<64x192xbf16>, vector<16x192xf32> -> vector<16x192xf32>
    %c0_11 = arith.constant 0 : index
    %c0_12 = arith.constant 0 : index
    %16 = vector.load %arg5[%c0_11, %c0_12] : memref<1x192xf32, #tpu.memory_space<vmem>>, vector<1x192xf32>
    %17 = vector.broadcast %16 : vector<1x192xf32> to vector<16x192xf32>
    %18 = arith.addf %15, %17 : vector<16x192xf32>
    %19 = vector.extract_strided_slice %18 {offsets = [0, 0], sizes = [16, 16], strides = [1, 1]} : vector<16x192xf32> to vector<16x16xf32>
    %20 = vector.extract_strided_slice %18 {offsets = [0, 16], sizes = [16, 16], strides = [1, 1]} : vector<16x192xf32> to vector<16x16xf32>
    %21 = vector.extract_strided_slice %18 {offsets = [0, 32], sizes = [16, 16], strides = [1, 1]} : vector<16x192xf32> to vector<16x16xf32>
    %22 = vector.extract_strided_slice %18 {offsets = [0, 48], sizes = [16, 16], strides = [1, 1]} : vector<16x192xf32> to vector<16x16xf32>
    %23 = vector.shape_cast %19 : vector<16x16xf32> to vector<1x16x16xf32>
    %24 = vector.shape_cast %20 : vector<16x16xf32> to vector<1x16x16xf32>
    %25 = vector.shape_cast %21 : vector<16x16xf32> to vector<1x16x16xf32>
    %26 = vector.shape_cast %22 : vector<16x16xf32> to vector<1x16x16xf32>
    %27 = tpu.concatenate %23, %24, %25, %26 in 0 : vector<1x16x16xf32>, vector<1x16x16xf32>, vector<1x16x16xf32>, vector<1x16x16xf32> -> vector<4x16x16xf32>
    %28 = vector.extract_strided_slice %18 {offsets = [0, 64], sizes = [16, 16], strides = [1, 1]} : vector<16x192xf32> to vector<16x16xf32>
    %29 = vector.extract_strided_slice %18 {offsets = [0, 80], sizes = [16, 16], strides = [1, 1]} : vector<16x192xf32> to vector<16x16xf32>
    %30 = vector.extract_strided_slice %18 {offsets = [0, 96], sizes = [16, 16], strides = [1, 1]} : vector<16x192xf32> to vector<16x16xf32>
    %31 = vector.extract_strided_slice %18 {offsets = [0, 112], sizes = [16, 16], strides = [1, 1]} : vector<16x192xf32> to vector<16x16xf32>
    %32 = vector.shape_cast %28 : vector<16x16xf32> to vector<1x16x16xf32>
    %33 = vector.shape_cast %29 : vector<16x16xf32> to vector<1x16x16xf32>
    %34 = vector.shape_cast %30 : vector<16x16xf32> to vector<1x16x16xf32>
    %35 = vector.shape_cast %31 : vector<16x16xf32> to vector<1x16x16xf32>
    %36 = tpu.concatenate %32, %33, %34, %35 in 0 : vector<1x16x16xf32>, vector<1x16x16xf32>, vector<1x16x16xf32>, vector<1x16x16xf32> -> vector<4x16x16xf32>
    %37 = vector.extract_strided_slice %18 {offsets = [0, 128], sizes = [16, 16], strides = [1, 1]} : vector<16x192xf32> to vector<16x16xf32>
    %38 = vector.extract_strided_slice %18 {offsets = [0, 144], sizes = [16, 16], strides = [1, 1]} : vector<16x192xf32> to vector<16x16xf32>
    %39 = vector.extract_strided_slice %18 {offsets = [0, 160], sizes = [16, 16], strides = [1, 1]} : vector<16x192xf32> to vector<16x16xf32>
    %40 = vector.extract_strided_slice %18 {offsets = [0, 176], sizes = [16, 16], strides = [1, 1]} : vector<16x192xf32> to vector<16x16xf32>
    %41 = vector.shape_cast %37 : vector<16x16xf32> to vector<1x16x16xf32>
    %42 = vector.shape_cast %38 : vector<16x16xf32> to vector<1x16x16xf32>
    %43 = vector.shape_cast %39 : vector<16x16xf32> to vector<1x16x16xf32>
    %44 = vector.shape_cast %40 : vector<16x16xf32> to vector<1x16x16xf32>
    %45 = tpu.concatenate %41, %42, %43, %44 in 0 : vector<1x16x16xf32>, vector<1x16x16xf32>, vector<1x16x16xf32>, vector<1x16x16xf32> -> vector<4x16x16xf32>
    %46 = arith.truncf %27 : vector<4x16x16xf32> to vector<4x16x16xbf16>
    %47 = arith.truncf %36 : vector<4x16x16xf32> to vector<4x16x16xbf16>
    "tpu.trace_start"() <{level = 10 : i32, message = "hqd,hkd->hqk"}> : () -> ()
    %cst_13 = arith.constant dense<0.000000e+00> : vector<4x16x16xf32>
    %48 = tpu.matmul %46, %47, %cst_13 {dimension_numbers = #tpu.dot_dimension_numbers<[2], [2], [1], [1], [0, 0, 0, 1, 1, 1], [0], [0]>} : vector<4x16x16xbf16>, vector<4x16x16xbf16>, vector<4x16x16xf32> -> vector<4x16x16xf32>
    "tpu.trace_stop"() : () -> ()
    %cst_14 = arith.constant 2.500000e-01 : f32
    %49 = vector.broadcast %cst_14 : f32 to vector<4x16x16xf32>
    %50 = arith.mulf %48, %49 : vector<4x16x16xf32>
    %cst_15 = arith.constant dense<0xFF800000> : vector<4x16xf32>
    %51 = vector.multi_reduction <maximumf>, %50, %cst_15 [2] : vector<4x16x16xf32> to vector<4x16xf32>
    %52 = vector.shape_cast %51 : vector<4x16xf32> to vector<4x16x1xf32>
    %53 = vector.broadcast %52 : vector<4x16x1xf32> to vector<4x16x16xf32>
    %54 = arith.subf %50, %53 : vector<4x16x16xf32>
    %55 = math.exp %54 : vector<4x16x16xf32>
    %cst_16 = arith.constant dense<0.000000e+00> : vector<4x16xf32>
    %56 = vector.multi_reduction <add>, %55, %cst_16 [2] : vector<4x16x16xf32> to vector<4x16xf32>
    %57 = vector.shape_cast %56 : vector<4x16xf32> to vector<4x16x1xf32>
    %58 = tpu.reciprocal %57 {approx = true} : vector<4x16x1xf32> -> vector<4x16x1xf32>
    %59 = vector.broadcast %58 : vector<4x16x1xf32> to vector<4x16x16xf32>
    %60 = arith.mulf %55, %59 : vector<4x16x16xf32>
    %61 = arith.truncf %60 : vector<4x16x16xf32> to vector<4x16x16xbf16>
    %62 = arith.truncf %45 : vector<4x16x16xf32> to vector<4x16x16xbf16>
    "tpu.trace_start"() <{level = 10 : i32, message = "hqk,hkd->hqd"}> : () -> ()
    %cst_17 = arith.constant dense<0.000000e+00> : vector<4x16x16xf32>
    %63 = tpu.matmul %61, %62, %cst_17 {dimension_numbers = #tpu.dot_dimension_numbers<[2], [1], [1], [2], [0, 0, 0, 1, 1, 2], [0], [0]>} : vector<4x16x16xbf16>, vector<4x16x16xbf16>, vector<4x16x16xf32> -> vector<4x16x16xf32>
    %cst_18 = arith.constant 0.000000e+00 : f32
    "tpu.trace_stop"() : () -> ()
    %64 = vector.broadcast %cst_18 : f32 to vector<16x64xf32>
    %65 = vector.extract_strided_slice %63 {offsets = [0, 0, 0], sizes = [1, 16, 16], strides = [1, 1, 1]} : vector<4x16x16xf32> to vector<1x16x16xf32>
    %66 = vector.shape_cast %65 : vector<1x16x16xf32> to vector<16x16xf32>
    %67 = arith.truncf %66 : vector<16x16xf32> to vector<16x16xbf16>
    %c0_19 = arith.constant 0 : index
    %c0_20 = arith.constant 0 : index
    %68 = vector.load %arg6[%c0_19, %c0_20] : memref<64x64xbf16, #tpu.memory_space<vmem>>, vector<16x64xbf16>
    %cst_21 = arith.constant dense<0.000000e+00> : vector<16x64xf32>
    %69 = tpu.matmul %67, %68, %cst_21 {dimension_numbers = #tpu.dot_dimension_numbers<[1], [0], [0], [1], [0, 0, 1, 1], [], []>} : vector<16x16xbf16>, vector<16x64xbf16>, vector<16x64xf32> -> vector<16x64xf32>
    %70 = arith.addf %64, %69 : vector<16x64xf32>
    %71 = vector.extract_strided_slice %63 {offsets = [1, 0, 0], sizes = [1, 16, 16], strides = [1, 1, 1]} : vector<4x16x16xf32> to vector<1x16x16xf32>
    %72 = vector.shape_cast %71 : vector<1x16x16xf32> to vector<16x16xf32>
    %73 = arith.truncf %72 : vector<16x16xf32> to vector<16x16xbf16>
    %c16 = arith.constant 16 : index
    %c0_22 = arith.constant 0 : index
    %74 = vector.load %arg6[%c16, %c0_22] : memref<64x64xbf16, #tpu.memory_space<vmem>>, vector<16x64xbf16>
    %cst_23 = arith.constant dense<0.000000e+00> : vector<16x64xf32>
    %75 = tpu.matmul %73, %74, %cst_23 {dimension_numbers = #tpu.dot_dimension_numbers<[1], [0], [0], [1], [0, 0, 1, 1], [], []>} : vector<16x16xbf16>, vector<16x64xbf16>, vector<16x64xf32> -> vector<16x64xf32>
    %76 = arith.addf %70, %75 : vector<16x64xf32>
    %77 = vector.extract_strided_slice %63 {offsets = [2, 0, 0], sizes = [1, 16, 16], strides = [1, 1, 1]} : vector<4x16x16xf32> to vector<1x16x16xf32>
    %78 = vector.shape_cast %77 : vector<1x16x16xf32> to vector<16x16xf32>
    %79 = arith.truncf %78 : vector<16x16xf32> to vector<16x16xbf16>
    %c32 = arith.constant 32 : index
    %c0_24 = arith.constant 0 : index
    %80 = vector.load %arg6[%c32, %c0_24] : memref<64x64xbf16, #tpu.memory_space<vmem>>, vector<16x64xbf16>
    %cst_25 = arith.constant dense<0.000000e+00> : vector<16x64xf32>
    %81 = tpu.matmul %79, %80, %cst_25 {dimension_numbers = #tpu.dot_dimension_numbers<[1], [0], [0], [1], [0, 0, 1, 1], [], []>} : vector<16x16xbf16>, vector<16x64xbf16>, vector<16x64xf32> -> vector<16x64xf32>
    %82 = arith.addf %76, %81 : vector<16x64xf32>
    %83 = vector.extract_strided_slice %63 {offsets = [3, 0, 0], sizes = [1, 16, 16], strides = [1, 1, 1]} : vector<4x16x16xf32> to vector<1x16x16xf32>
    %84 = vector.shape_cast %83 : vector<1x16x16xf32> to vector<16x16xf32>
    %85 = arith.truncf %84 : vector<16x16xf32> to vector<16x16xbf16>
    %c48 = arith.constant 48 : index
    %c0_26 = arith.constant 0 : index
    %86 = vector.load %arg6[%c48, %c0_26] : memref<64x64xbf16, #tpu.memory_space<vmem>>, vector<16x64xbf16>
    %cst_27 = arith.constant dense<0.000000e+00> : vector<16x64xf32>
    %87 = tpu.matmul %85, %86, %cst_27 {dimension_numbers = #tpu.dot_dimension_numbers<[1], [0], [0], [1], [0, 0, 1, 1], [], []>} : vector<16x16xbf16>, vector<16x64xbf16>, vector<16x64xf32> -> vector<16x64xf32>
    %88 = arith.addf %82, %87 : vector<16x64xf32>
    %c0_28 = arith.constant 0 : index
    %c0_29 = arith.constant 0 : index
    %89 = vector.load %arg7[%c0_28, %c0_29] : memref<1x64xf32, #tpu.memory_space<vmem>>, vector<1x64xf32>
    %90 = vector.broadcast %89 : vector<1x64xf32> to vector<16x64xf32>
    %91 = arith.addf %88, %90 : vector<16x64xf32>
    %92 = arith.addf %12, %91 : vector<16x64xf32>
    %c0_30 = arith.constant 0 : index
    %c0_31 = arith.constant 0 : index
    %93 = vector.load %arg8[%c0_30, %c0_31] : memref<1x64xf32, #tpu.memory_space<vmem>>, vector<1x64xf32>
    %c0_32 = arith.constant 0 : index
    %c0_33 = arith.constant 0 : index
    %94 = vector.load %arg9[%c0_32, %c0_33] : memref<1x64xf32, #tpu.memory_space<vmem>>, vector<1x64xf32>
    %cst_34 = arith.constant dense<0.000000e+00> : vector<16xf32>
    %95 = vector.multi_reduction <add>, %92, %cst_34 [1] : vector<16x64xf32> to vector<16xf32>
    %96 = vector.shape_cast %95 : vector<16xf32> to vector<16x1xf32>
    %cst_35 = arith.constant 6.400000e+01 : f32
    %97 = vector.broadcast %cst_35 : f32 to vector<16x1xf32>
    %98 = arith.divf %96, %97 : vector<16x1xf32>
    %99 = vector.broadcast %98 : vector<16x1xf32> to vector<16x64xf32>
    %100 = arith.subf %92, %99 : vector<16x64xf32>
    %101 = arith.mulf %100, %100 : vector<16x64xf32>
    %cst_36 = arith.constant dense<0.000000e+00> : vector<16xf32>
    %102 = vector.multi_reduction <add>, %101, %cst_36 [1] : vector<16x64xf32> to vector<16xf32>
    %103 = vector.shape_cast %102 : vector<16xf32> to vector<16x1xf32>
    %cst_37 = arith.constant 6.400000e+01 : f32
    %104 = vector.broadcast %cst_37 : f32 to vector<16x1xf32>
    %105 = arith.divf %103, %104 : vector<16x1xf32>
    %106 = vector.broadcast %98 : vector<16x1xf32> to vector<16x64xf32>
    %107 = arith.subf %92, %106 : vector<16x64xf32>
    %cst_38 = arith.constant 9.99999974E-6 : f32
    %108 = vector.broadcast %cst_38 : f32 to vector<16x1xf32>
    %109 = arith.addf %105, %108 : vector<16x1xf32>
    %110 = math.rsqrt %109 : vector<16x1xf32>
    %111 = vector.broadcast %110 : vector<16x1xf32> to vector<16x64xf32>
    %112 = arith.mulf %107, %111 : vector<16x64xf32>
    %113 = vector.broadcast %93 : vector<1x64xf32> to vector<16x64xf32>
    %114 = arith.mulf %112, %113 : vector<16x64xf32>
    %115 = vector.broadcast %94 : vector<1x64xf32> to vector<16x64xf32>
    %116 = arith.addf %114, %115 : vector<16x64xf32>
    %117 = arith.truncf %116 : vector<16x64xf32> to vector<16x64xbf16>
    %c0_39 = arith.constant 0 : index
    %c0_40 = arith.constant 0 : index
    %118 = vector.load %arg10[%c0_39, %c0_40] : memref<64x256xbf16, #tpu.memory_space<vmem>>, vector<64x256xbf16>
    %cst_41 = arith.constant dense<0.000000e+00> : vector<16x256xf32>
    %119 = tpu.matmul %117, %118, %cst_41 {dimension_numbers = #tpu.dot_dimension_numbers<[1], [0], [0], [1], [0, 0, 1, 1], [], []>} : vector<16x64xbf16>, vector<64x256xbf16>, vector<16x256xf32> -> vector<16x256xf32>
    %c0_42 = arith.constant 0 : index
    %c0_43 = arith.constant 0 : index
    %120 = vector.load %arg11[%c0_42, %c0_43] : memref<1x256xf32, #tpu.memory_space<vmem>>, vector<1x256xf32>
    %121 = vector.broadcast %120 : vector<1x256xf32> to vector<16x256xf32>
    %122 = arith.addf %119, %121 : vector<16x256xf32>
    %cst_44 = arith.constant 0.000000e+00 : f32
    %123 = vector.broadcast %cst_44 : f32 to vector<16x256xf32>
    %124 = arith.maximumf %122, %123 : vector<16x256xf32>
    %125 = arith.truncf %124 : vector<16x256xf32> to vector<16x256xbf16>
    %c0_45 = arith.constant 0 : index
    %c0_46 = arith.constant 0 : index
    %126 = vector.load %arg12[%c0_45, %c0_46] : memref<256x64xbf16, #tpu.memory_space<vmem>>, vector<256x64xbf16>
    %cst_47 = arith.constant dense<0.000000e+00> : vector<16x64xf32>
    %127 = tpu.matmul %125, %126, %cst_47 {dimension_numbers = #tpu.dot_dimension_numbers<[1], [0], [0], [1], [0, 0, 1, 1], [], []>} : vector<16x256xbf16>, vector<256x64xbf16>, vector<16x64xf32> -> vector<16x64xf32>
    %c0_48 = arith.constant 0 : index
    %c0_49 = arith.constant 0 : index
    %128 = vector.load %arg13[%c0_48, %c0_49] : memref<1x64xf32, #tpu.memory_space<vmem>>, vector<1x64xf32>
    %129 = vector.broadcast %128 : vector<1x64xf32> to vector<16x64xf32>
    %130 = arith.addf %127, %129 : vector<16x64xf32>
    %131 = arith.addf %116, %130 : vector<16x64xf32>
    %c0_50 = arith.constant 0 : index
    %c0_51 = arith.constant 0 : index
    %132 = vector.load %arg14[%c0_50, %c0_51] : memref<1x64xf32, #tpu.memory_space<vmem>>, vector<1x64xf32>
    %c0_52 = arith.constant 0 : index
    %c0_53 = arith.constant 0 : index
    %133 = vector.load %arg15[%c0_52, %c0_53] : memref<1x64xf32, #tpu.memory_space<vmem>>, vector<1x64xf32>
    %cst_54 = arith.constant dense<0.000000e+00> : vector<16xf32>
    %134 = vector.multi_reduction <add>, %131, %cst_54 [1] : vector<16x64xf32> to vector<16xf32>
    %135 = vector.shape_cast %134 : vector<16xf32> to vector<16x1xf32>
    %cst_55 = arith.constant 6.400000e+01 : f32
    %136 = vector.broadcast %cst_55 : f32 to vector<16x1xf32>
    %137 = arith.divf %135, %136 : vector<16x1xf32>
    %138 = vector.broadcast %137 : vector<16x1xf32> to vector<16x64xf32>
    %139 = arith.subf %131, %138 : vector<16x64xf32>
    %140 = arith.mulf %139, %139 : vector<16x64xf32>
    %cst_56 = arith.constant dense<0.000000e+00> : vector<16xf32>
    %141 = vector.multi_reduction <add>, %140, %cst_56 [1] : vector<16x64xf32> to vector<16xf32>
    %142 = vector.shape_cast %141 : vector<16xf32> to vector<16x1xf32>
    %cst_57 = arith.constant 6.400000e+01 : f32
    %143 = vector.broadcast %cst_57 : f32 to vector<16x1xf32>
    %144 = arith.divf %142, %143 : vector<16x1xf32>
    %145 = vector.broadcast %137 : vector<16x1xf32> to vector<16x64xf32>
    %146 = arith.subf %131, %145 : vector<16x64xf32>
    %cst_58 = arith.constant 9.99999974E-6 : f32
    %147 = vector.broadcast %cst_58 : f32 to vector<16x1xf32>
    %148 = arith.addf %144, %147 : vector<16x1xf32>
    %149 = math.rsqrt %148 : vector<16x1xf32>
    %150 = vector.broadcast %149 : vector<16x1xf32> to vector<16x64xf32>
    %151 = arith.mulf %146, %150 : vector<16x64xf32>
    %152 = vector.broadcast %132 : vector<1x64xf32> to vector<16x64xf32>
    %153 = arith.mulf %151, %152 : vector<16x64xf32>
    %154 = vector.broadcast %133 : vector<1x64xf32> to vector<16x64xf32>
    %155 = arith.addf %153, %154 : vector<16x64xf32>
    %c0_59 = arith.constant 0 : index
    %c0_60 = arith.constant 0 : index
    %c0_61 = arith.constant 0 : index
    %156 = vector.load %arg16[%c0_59, %c0_60, %c0_61] : memref<1x16x64xf32, #tpu.memory_space<vmem>>, vector<1x16x64xf32>
    %157 = vector.shape_cast %156 : vector<1x16x64xf32> to vector<16x64xf32>
    %158 = vector.shape_cast %155 : vector<16x64xf32> to vector<1x16x64xf32>
    tpu.vector_store %arg16[%c0_59, %c0_60, %c0_61], %158 {strides = array<i32>} : memref<1x16x64xf32, #tpu.memory_space<vmem>>, vector<1x16x64xf32>,
    return
  }
  func.func @transform_0(%arg0: i32) -> (i32, i32, i32) {
    %c0_i32 = arith.constant 0 : i32
    %c0_i32_0 = arith.constant 0 : i32
    %c0_i32_1 = arith.constant 0 : i32
    return %arg0, %c0_i32, %c0_i32_0 : i32, i32, i32
  }
  func.func @transform_1(%arg0: i32) -> (i32, i32) {
    %c0_i32 = arith.constant 0 : i32
    %c0_i32_0 = arith.constant 0 : i32
    %c0_i32_1 = arith.constant 0 : i32
    return %c0_i32, %c0_i32_0 : i32, i32
  }
  func.func @transform_2(%arg0: i32) -> (i32, i32) {
    %c0_i32 = arith.constant 0 : i32
    %c0_i32_0 = arith.constant 0 : i32
    %c0_i32_1 = arith.constant 0 : i32
    return %c0_i32, %c0_i32_0 : i32, i32
  }
  func.func @transform_3(%arg0: i32) -> (i32, i32) {
    %c0_i32 = arith.constant 0 : i32
    %c0_i32_0 = arith.constant 0 : i32
    %c0_i32_1 = arith.constant 0 : i32
    return %c0_i32, %c0_i32_0 : i32, i32
  }
  func.func @transform_4(%arg0: i32) -> (i32, i32) {
    %c0_i32 = arith.constant 0 : i32
    %c0_i32_0 = arith.constant 0 : i32
    %c0_i32_1 = arith.constant 0 : i32
    return %c0_i32, %c0_i32_0 : i32, i32
  }
  func.func @transform_5(%arg0: i32) -> (i32, i32) {
    %c0_i32 = arith.constant 0 : i32
    %c0_i32_0 = arith.constant 0 : i32
    %c0_i32_1 = arith.constant 0 : i32
    return %c0_i32, %c0_i32_0 : i32, i32
  }
  func.func @transform_6(%arg0: i32) -> (i32, i32) {
    %c0_i32 = arith.constant 0 : i32
    %c0_i32_0 = arith.constant 0 : i32
    %c0_i32_1 = arith.constant 0 : i32
    return %c0_i32, %c0_i32_0 : i32, i32
  }
  func.func @transform_7(%arg0: i32) -> (i32, i32) {
    %c0_i32 = arith.constant 0 : i32
    %c0_i32_0 = arith.constant 0 : i32
    %c0_i32_1 = arith.constant 0 : i32
    return %c0_i32, %c0_i32_0 : i32, i32
  }
  func.func @transform_8(%arg0: i32) -> (i32, i32) {
    %c0_i32 = arith.constant 0 : i32
    %c0_i32_0 = arith.constant 0 : i32
    %c0_i32_1 = arith.constant 0 : i32
    return %c0_i32, %c0_i32_0 : i32, i32
  }
  func.func @transform_9(%arg0: i32) -> (i32, i32) {
    %c0_i32 = arith.constant 0 : i32
    %c0_i32_0 = arith.constant 0 : i32
    %c0_i32_1 = arith.constant 0 : i32
    return %c0_i32, %c0_i32_0 : i32, i32
  }
  func.func @transform_10(%arg0: i32) -> (i32, i32) {
    %c0_i32 = arith.constant 0 : i32
    %c0_i32_0 = arith.constant 0 : i32
    %c0_i32_1 = arith.constant 0 : i32
    return %c0_i32, %c0_i32_0 : i32, i32
  }
  func.func @transform_11(%arg0: i32) -> (i32, i32) {
    %c0_i32 = arith.constant 0 : i32
    %c0_i32_0 = arith.constant 0 : i32
    %c0_i32_1 = arith.constant 0 : i32
    return %c0_i32, %c0_i32_0 : i32, i32
  }
  func.func @transform_12(%arg0: i32) -> (i32, i32) {
    %c0_i32 = arith.constant 0 : i32
    %c0_i32_0 = arith.constant 0 : i32
    %c0_i32_1 = arith.constant 0 : i32
    return %c0_i32, %c0_i32_0 : i32, i32
  }
  func.func @transform_13(%arg0: i32) -> (i32, i32) {
    %c0_i32 = arith.constant 0 : i32
    %c0_i32_0 = arith.constant 0 : i32
    %c0_i32_1 = arith.constant 0 : i32
    return %c0_i32, %c0_i32_0 : i32, i32
  }
  func.func @transform_14(%arg0: i32) -> (i32, i32) {
    %c0_i32 = arith.constant 0 : i32
    %c0_i32_0 = arith.constant 0 : i32
    %c0_i32_1 = arith.constant 0 : i32
    return %c0_i32, %c0_i32_0 : i32, i32
  }
  func.func @transform_15(%arg0: i32) -> (i32, i32, i32) {
    %c0_i32 = arith.constant 0 : i32
    %c0_i32_0 = arith.constant 0 : i32
    %c0_i32_1 = arith.constant 0 : i32
    return %arg0, %c0_i32, %c0_i32_0 : i32, i32, i32
  }
}

</mosaic_0001>

<bundles_post_ra>
// kernel: tpu_custom_call.1
= control target key start
LH: loop header
LB: loop body
LE: loop exit
PB: predicated region body
PF: predicated region fallthrough
CT: control target
= control target key end

     0   :  { %s2461_s0 = inlined_call_operand.vmem [shape: s32[2,16,1], index: 0, kind: input, shape index: {}]   ;;  %s2462_s1 = inlined_call_operand.vmem [shape: f32[16,64], index: 1, kind: input, shape index: {}]   ;;  %s2463_s2 = inlined_call_operand.vmem [shape: bf16[32,64], index: 2, kind: input, shape index: {}]   ;;  %s2464_s3 = inlined_call_operand.vmem [shape: bf16[64,192], index: 3, kind: input, shape index: {}]   ;;  %s2465_s4 = inlined_call_operand.vmem [shape: f32[1,192], index: 4, kind: input, shape index: {}]   ;;  %s2466_s5 = inlined_call_operand.vmem [shape: bf16[64,64], index: 5, kind: input, shape index: {}]   ;;  %s2467_s6 = inlined_call_operand.vmem [shape: f32[1,64], index: 6, kind: input, shape index: {}]   ;;  %s2468_s7 = inlined_call_operand.vmem [shape: f32[1,64], index: 7, kind: input, shape index: {}]   ;;  %s2469_s8 = inlined_call_operand.vmem [shape: f32[1,64], index: 8, kind: input, shape index: {}]   ;;  %s2470_s9 = inlined_call_operand.vmem [shape: bf16[64,256], index: 9, kind: input, shape index: {}]   ;;  %s2471_s10 = inlined_call_operand.vmem [shape: f32[1,256], index: 10, kind: input, shape index: {}]   ;;  %s2472_s11 = inlined_call_operand.vmem [shape: bf16[256,64], index: 11, kind: input, shape index: {}]   ;;  %s2473_s12 = inlined_call_operand.vmem [shape: f32[1,64], index: 12, kind: input, shape index: {}]   ;;  %s2474_s13 = inlined_call_operand.vmem [shape: f32[1,64], index: 13, kind: input, shape index: {}]   ;;  %s2475_s14 = inlined_call_operand.vmem [shape: f32[1,64], index: 14, kind: input, shape index: {}]   ;;  %s2476_s15 = inlined_call_operand.hbm [shape: f32[2,16,64], index: 15, kind: output, shape index: {}]  }
   0x1   :  { %2481 = sst [smem:[#allocation9_spill]] %s2461_s0 }
   0x2   :  { %2482 = sst [smem:[#allocation10_spill]] %s2462_s1 }
   0x3   :  { %20 = vsyncpa [#allocation3], 0 }
   0x4   :  { %22 = vsyncpa [#allocation3 + $0x1], 0  ;;  %s2083_s18 = smov 0   ;;  %s2085_s19 = smov 0  }
   0x5   :  { %s2087_s20 = smov 0   ;;  %s2089_s21 = smov 0  }
   0x6 LB: > { %2483 = sst [smem:[#allocation5_spill]] %s1988_s20  ;;  %s2104_s22 = sadd.s32 4294967295, %s1992_s21   ;;  %s1992_s21 = sphi %s2089_s21, %s2492_s21   ;;  %s1988_s20 = sphi %s2087_s20, %s2494_s20   ;;  %s1984_s19 = sphi %s2085_s19, %s2496_s19   ;;  %s1980_s18 = sphi %s2083_s18, %s2495_s18  }
   0x7   : > { %s1582_s23 = sadd.s32 4294967294, %s1992_s21   ;;  %s2108_s24 = sadd.s32 1, %s1992_s21  }
   0x8   : > { %2484 = sst [smem:[#allocation6_spill]] %s2108_s24  ;;  %s355_s25 = sadd.s32 1, %s1988_s20 }
   0x9   : > { %s352_s26 = ssub.s32 %s1992_s21, %s2108_s24  ;;  %p365_p0 = scmp.ne.s32.totalorder %s1988_s20, %s1984_s19 }
   0xa   : > { %p353_p1 = scmp.eq.s32.totalorder %s352_s26, 0  ;;  %p366_p2 = scmp.eq.s32.totalorder %s2104_s22, 1 }
   0xb   : > { %p371_p3 = scmp.ne.s32.totalorder %s1984_s19, %s1980_s18  ;;  %p372_p4 = scmp.eq.s32.totalorder %s1582_s23, 1 }
   0xc   : > { %s2119_s27 = scalar_select %p353_p1, %s1988_s20, %s355_s25  }
   0xd   : > { %p2121_p5 = por %p366_p2, %p365_p0  ;;  %p2125_p6 = por %p372_p4, %p371_p3 }
   0xe   : > { %2485 = sst [smem:[#allocation7_spill]] %s2119_s27  ;;  %p1585_p7 = scmp.ge.s32.totalorder %s1992_s21, 1 }
   0xf   : > { %s2487_s29 = scalar_select %p2125_p6, 1, 0 }
  0x10   : > { %p440_p8 = scmp.lt.s32.totalorder %s1992_s21, 3 }
  0x11   : > { %2488 = sst [smem:[#allocation8_spill]] %s2487_s29 }
  0x12   : > { %p441_p9 = pnand %p1585_p7, %p440_p8 }
  0x13   : > { %p488_p10 = scmp.lt.s32.totalorder (!%p441_p9), %s2104_s22, 1  ;;  %s2489_s0 = sld [smem:[#allocation9_spill]] (!%p441_p9) }
  0x14   : > { %444 = sbr.rel (%p441_p9) target bundleno = 2236 (0x8bc), region = 80  ;;  %s2490_s1 = sld [smem:[#allocation10_spill]] (!%p441_p9) }
  0x15   : > { %s1996_s23 = smov (!%p441_p9), 80   ;;  %s1998_s26 = smov (!%p441_p9), 112  }
  0x16   : > { %s485_s20 = sand.u32 (!%p441_p9), 1, %s1984_s19   ;;  %s1950_s17 = scalar_lea.hbm (!%p441_p9), %s2476_s15, 32 }
  0x19   : > { %v1994_v0 = vmov 0   ;;  %s489_s30 = scalar_select %p488_p10, %s2104_s22, 1  ;;  %v1765_v3 = vld [vmem:[%s2463_s2 + $0x8] sm:$0xff]  ;;  %v1764_v4 = vld [vmem:[%s2463_s2] sm:$0xff]  ;;  %v1624_v5 = vld [vmem:[%s2464_s3 + $0x30] sm:$0xf]  ;;  %v496_v8 = vlaneseq }
  0x1a   : > { %1851 = vset.pattern.permute.xlu0 %v1994_v0  ;;  %537 = vmatpush.bf16.msra.mxu0 %v1765_v3  ;;  %v1773_v6 = vld [vmem:[%s2464_s3 + $0x34] sm:$0xf0]  ;;  %v1995_v12 = vmov 0.0   ;;  %vm527_vm2 = vcmask 261120   ;;  %v1616_v16 = vld [vmem:[%s2464_s3 + $0x20] sm:$0xf] }
  0x1b   : > { %s1763_s16 = sshll.u32 %s489_s30, 4  ;;  %v1625_v7 = vor.u32 %v1773_v6, %v1624_v5  ;;  %v497_v10 = vand.u32 127, %v496_v8  ;;  %v1771_v17 = vld [vmem:[%s2464_s3 + $0x24] sm:$0xf0]  ;;  %v1608_v19 = vld [vmem:[%s2464_s3 + $0x10] sm:$0xf] }
  0x1c   : > { %s492_s25 = scalar_lea.vmem %s2489_s0, %s1763_s16  ;;  %v1617_v18 = vor.u32 %v1771_v17, %v1616_v16  ;;  %v1769_v20 = vld [vmem:[%s2464_s3 + $0x14] sm:$0xf0]  ;;  %v1600_v22 = vld [vmem:[%s2464_s3] sm:$0xf]  ;;  %v1767_v23 = vld [vmem:[%s2464_s3 + $0x4] sm:$0xf0] }
  0x1d   : > { %v494_v1 = vld [vmem:[%s492_s25] sm:$0xff]  ;;  %v495_v2 = vld [vmem:[%s492_s25 + $0x8] sm:$0xff]  ;;  %608 = vmatpush.bf16.msra.mxu2 %v1625_v7  ;;  %v1609_v21 = vor.u32 %v1769_v20, %v1608_v19  ;;  %v1601_v24 = vor.u32 %v1767_v23, %v1600_v22  ;;  %v1772_v25 = vld [vmem:[%s2464_s3 + $0x34] sm:$0xf]  ;;  %vm600_vm3 = vcmask 523264   ;;  %s1997_s25 = smov 96  }
  0x1e   : > { %499 = vperm.xlu0 %1851, %v494_v1   ;;  %538 = vmatpush.bf16.msra.mxu0 %v1764_v4  ;;  %v1626_v26 = vld [vmem:[%s2464_s3 + $0x38] sm:$0xf0]  ;;  %v1770_v28 = vld [vmem:[%s2464_s3 + $0x24] sm:$0xf]  ;;  %v1618_v29 = vld [vmem:[%s2464_s3 + $0x28] sm:$0xf0] }
  0x1f   : > { %v1629_v27 = vor.u32 %v1772_v25, %v1626_v26  ;;  %v1621_v30 = vor.u32 %v1770_v28, %v1618_v29  ;;  %v1768_v31 = vld [vmem:[%s2464_s3 + $0x14] sm:$0xf]  ;;  %v1610_v32 = vld [vmem:[%s2464_s3 + $0x18] sm:$0xf0]  ;;  %v1766_v34 = vld [vmem:[%s2464_s3 + $0x4] sm:$0xf] }
  0x20   : > { %v1613_v33 = vor.u32 %v1768_v31, %v1610_v32  ;;  %v1602_v35 = vld [vmem:[%s2464_s3 + $0x8] sm:$0xf0]  ;;  %v513_v38 = vld [vmem:[%s2490_s1] sm:$0xff]  ;;  %s1999_s30 = smov 64   ;;  %vm687_vm4 = vcmask 130048  }
  0x21   : > { %609 = vmatpush.bf16.msra.mxu2 %v1617_v18  ;;  %v1605_v36 = vor.u32 %v1766_v34, %v1602_v35  ;;  %v514_v39 = vld [vmem:[%s2490_s1 + $0x8] sm:$0xff]  ;;  %v554_v45 = vld [vmem:[%s2465_s4] sm:$0x3] }
  0x22   : > { %v556_v46 = vperm.slane %v554_v45, 0  ;;  %v557_v55 = vperm.slane %v554_v45, 1 }
  0x25   : > { %610 = vmatpush.bf16.msra.mxu2 %v1609_v21 }
  0x26   : > { %502 = vperm.xlu0 %1851, %v495_v2  }
  0x29   : > { %611 = vmatpush.bf16.msra.mxu2 %v1601_v24 }
  0x2d   : > { %622 = vmatpush.bf16.msrb.mxu2 %v1629_v27 }
  0x31   : > { %623 = vmatpush.bf16.msrb.mxu2 %v1621_v30 }
  0x35   : > { %624 = vmatpush.bf16.msrb.mxu2 %v1613_v33 }
  0x39   : > { %625 = vmatpush.bf16.msrb.mxu2 %v1605_v36 }
  0x90   : > { %v500_v9 = vpop.permute.xlu0 %499 }
  0x91   : > { %vm504_vm0 = vcmp.eq.s32.totalorder %v497_v10, %v500_v9 }
  0x92   : > { %v506_v13 = vsel %vm504_vm0, 1.0, %v1995_v12 }
  0x98   : > { %v503_v11 = vpop.permute.xlu0 %502 }
  0x99   : > { %vm505_vm1 = vcmp.eq.s32.totalorder %v497_v10, %v503_v11 }
  0x9a   : > { %v507_v14 = vsel %vm505_vm1, 1.0, %v1995_v12 }
  0x9b   : > { %v508_v15 = vpack.c.bf16 %v507_v14, %v506_v13 }
  0x9d   : > { %1597 = vmatmul.msk.bf16.vlgmr.msra.gmra.mxu0 %vm527_vm2, %v508_v15 }
 0x11a   : > { %v540_v37 = vpop.f32.mrf.mxu0 }
 0x11b   : > { %v2196_v41 = vadd.f32 %v540_v37, %v513_v38 }
 0x122   : > { %v542_v40 = vpop.f32.mrf.mxu0 }
 0x123   : > { %v2198_v42 = vadd.f32 %v542_v40, %v514_v39 }
 0x125   : > { %v545_v43 = vpack.c.bf16 %v2198_v42, %v2196_v41 }
 0x127   : > { %1630 = vmatmul.msk.bf16.vlgmr.msra.gmra.mxu2 %vm600_vm3, %v545_v43 }
 0x137   : > { %1631 = vmatmul.msk.bf16.vlgmr.msrb.gmra.mxu2 %vm600_vm3, %v545_v43 }
 0x1aa   : > { %v613_v44 = vpop.f32.mrf.mxu2 }
 0x1ab   : > { %v614_v48 = vadd.f32 %v613_v44, %v556_v46 }
 0x1ad   : > { %v672_v52 = vpack.c.bf16 %v614_v48, %v614_v48 }
 0x1af   : > { %v682_v56 = vunpack.c.l.b16 %v672_v52 }
 0x1b2   : > { %v615_v47 = vpop.f32.mrf.mxu2 }
 0x1b3   : > { %v616_v49 = vadd.f32 %v615_v47, %v556_v46 }
 0x1b5   : > { %v1862_v50 = vpack.i.bf16 %v616_v49, %v614_v48  ;;  %v673_v51 = vpack.c.bf16 %v616_v49, %v616_v49 }
 0x1b7   : > { %1863 = vrot.lane.b32.xlu2 %v1862_v50, %s1996_s23  ;;  %1853 = vrot.lane.b32.xlu1 %v1862_v50, %s1997_s25  ;;  %v683_v53 = vunpack.c.l.b16 %v673_v51 }
 0x1b9   : > { %v684_v57 = vpack.c.b16 %v683_v53, %v682_v56 }
 0x1ba   : > { %v627_v54 = vpop.f32.mrf.mxu2 }
 0x1bb   : > { %v628_v58 = vadd.f32 %v627_v54, %v557_v55 }
 0x1bd   : > { %v893_v60 = vpack.c.bf16 %v628_v58, %v628_v58 }
 0x1bf   : > { %1858 = vrot.lane.b32.xlu1 %v1862_v50, %s1998_s26  ;;  %685 = vrot.lane.b32.xlu2 %v684_v57, %s1999_s30  ;;  %v908_v0 = vunpack.c.l.b16 %v893_v60 }
 0x1c2   : > { %v629_v59 = vpop.f32.mrf.mxu2 }
 0x1c3   : > { %v630_v61 = vadd.f32 %v629_v59, %v557_v55 }
 0x1c5   : > { %v894_v62 = vpack.c.bf16 %v630_v61, %v630_v61  ;;  %v2211_v63 = vpack.i.bf16 %v630_v61, %v628_v58 }
 0x1c7   : > { %v909_v1 = vunpack.c.l.b16 %v894_v62 }
 0x1c9   : > { %v910_v2 = vpack.c.b16 %v909_v1, %v908_v0 }
 0x1cb   : > { %922 = vmatpush.bf16.msra.mxu2 %v910_v2 }
 0x211   : > { %v1864_v3 = vpop.permute.xlu2 %1863 }
 0x212   : > { %v1866_v4 = vunpack.i.h.bf16 %v1864_v3  ;;  %v1865_v5 = vunpack.i.l.bf16 %v1864_v3 }
 0x214   : > { %v679_v6 = vpack.c.bf16 %v1866_v4, %v1866_v4  ;;  %v678_v7 = vpack.c.bf16 %v1865_v5, %v1865_v5 }
 0x216   : > { %v765_v8 = vunpack.c.l.b16 %v679_v6  ;;  %v764_v9 = vunpack.c.l.b16 %v678_v7 }
 0x218   : > { %v766_v10 = vpack.c.b16 %v765_v8, %v764_v9 }
 0x219   : > { %v686_v11 = vpop.permute.xlu2 %685 }
 0x21a   : > { %767 = vrot.lane.b32.xlu2 %v766_v10, %s1999_s30  ;;  %v692_v12 = vsel %vm687_vm4, %v686_v11, 0 }
 0x21b   : > { %701 = vmatpush.bf16.xpose.msra.mxu3 %v692_v12 }
 0x222   : > { %1632 = vmatmul.msk.bf16.vlgmr.msra.gmra.mxu3 %vm687_vm4, %v684_v57 }
 0x229   : > { %v1854_v13 = vpop.permute.xlu1 %1853 }
 0x22a   : > { %v1856_v14 = vunpack.i.h.bf16 %v1854_v13  ;;  %v1855_v15 = vunpack.i.l.bf16 %v1854_v13 }
 0x22c   : > { %v677_v16 = vpack.c.bf16 %v1856_v14, %v1856_v14  ;;  %v676_v17 = vpack.c.bf16 %v1855_v15, %v1855_v15 }
 0x22e   : > { %v738_v18 = vunpack.c.l.b16 %v677_v16  ;;  %v737_v19 = vunpack.c.l.b16 %v676_v17 }
 0x230   : > { %v739_v20 = vpack.c.b16 %v738_v18, %v737_v19 }
 0x231   : > { %v1859_v21 = vpop.permute.xlu1 %1858 }
 0x232   : > { %v1861_v22 = vunpack.i.h.bf16 %v1859_v21  ;;  %v1860_v23 = vunpack.i.l.bf16 %v1859_v21  ;;  %740 = vrot.lane.b32.xlu0 %v739_v20, %s1999_s30 }
 0x234   : > { %v675_v24 = vpack.c.bf16 %v1861_v22, %v1861_v22  ;;  %v674_v25 = vpack.c.bf16 %v1860_v23, %v1860_v23 }
 0x236   : > { %v711_v26 = vunpack.c.l.b16 %v675_v24  ;;  %v710_v27 = vunpack.c.l.b16 %v674_v25 }
 0x238   : > { %v712_v28 = vpack.c.b16 %v711_v26, %v710_v27 }
 0x23a   : > { %713 = vrot.lane.b32.xlu1 %v712_v28, %s1999_s30 }
 0x274   : > { %v768_v29 = vpop.permute.xlu2 %767 }
 0x275   : > { %v773_v30 = vsel %vm687_vm4, %v768_v29, 0 }
 0x276   : > { %782 = vmatpush.bf16.xpose.msra.mxu1 %v773_v30 }
 0x27d   : > { %1635 = vmatmul.msk.bf16.vlgmr.msra.gmra.mxu1 %vm687_vm4, %v766_v10 }
 0x2a4   : > { %v741_v31 = vpop.permute.xlu0 %740 }
 0x2a5   : > { %v703_v32 = vpop.f32.mrf.mxu3  ;;  %v746_v33 = vsel %vm687_vm4, %v741_v31, 0 }
 0x2a6   : > { %v789_v34 = vmul.f32 0.25, %v703_v32  ;;  %755 = vmatpush.bf16.xpose.msrb.mxu3 %v746_v33 }
 0x2a8   : > { %v797_v35 = vsel %vm687_vm4, %v789_v34, -inf }
 0x2a9   : > { %798 = vmax.xlane.f32.xlu2 %v797_v35 }
 0x2ac   : > { %v714_v36 = vpop.permute.xlu1 %713 }
 0x2ad   : > { %v705_v37 = vpop.f32.mrf.mxu3  ;;  %1634 = vmatmul.msk.bf16.vlgmr.msrb.gmra.mxu3 %vm687_vm4, %v739_v20  ;;  %v719_v38 = vsel %vm687_vm4, %v714_v36, 0 }
 0x2ae   : > { %v790_v39 = vmul.f32 0.25, %v705_v37  ;;  %728 = vmatpush.bf16.xpose.msrb.mxu0 %v719_v38 }
 0x2b0   : > { %v800_v40 = vsel %vm687_vm4, %v790_v39, -inf }
 0x2b1   : > { %801 = vmax.xlane.f32.xlu2 %v800_v40 }
 0x2b5   : > { %1633 = vmatmul.msk.bf16.vlgmr.msrb.gmra.mxu0 %vm687_vm4, %v712_v28 }
 0x2fa   : > { %v784_v43 = vpop.f32.mrf.mxu1 }
 0x2fb   : > { %v795_v44 = vmul.f32 0.25, %v784_v43 }
 0x2fd   : > { %v815_v45 = vsel %vm687_vm4, %v795_v44, -inf }
 0x2fe   : > { %816 = vmax.xlane.f32.xlu2 %v815_v45 }
 0x302   : > { %v786_v60 = vpop.f32.mrf.mxu1 }
 0x303   : > { %v796_v1 = vmul.f32 0.25, %v786_v60 }
 0x305   : > { %v818_v3 = vsel %vm687_vm4, %v796_v1, -inf }
 0x31c   : > { %v799_v46 = vpop.xlane.xlu2 %798 }
 0x31d   : > { %v821_v57 = vsub.f32 %v789_v34, %v799_v46 }
 0x31f   : > { %v829_v0 = vmul.f32 1.442695, %v821_v57 }
 0x324   : > { %v802_v51 = vpop.xlane.xlu2 %801 }
 0x325   : > { %v822_v55 = vsub.f32 %v790_v39, %v802_v51 }
 0x327   : > { %v831_v61 = vmul.f32 1.442695, %v822_v55 }
 0x329   : > { %1888 = vpow2.f32 %v831_v61 }
 0x32a   : > { %1890 = vpow2.f32 %v829_v0 }
 0x32f   : > { %v1889_v4 = vpop.eup %1888 }
 0x330   : > { %v757_v47 = vpop.f32.mrf.mxu3  ;;  %v1891_v5 = vpop.eup %1890  ;;  %v848_v6 = vsel %vm687_vm4, %v1889_v4, 0.0 }
 0x331   : > { %v793_v53 = vmul.f32 0.25, %v757_v47  ;;  %v845_v7 = vsel %vm687_vm4, %v1891_v5, 0.0 }
 0x332   : > { %v730_v48 = vpop.f32.mrf.mxu0 }
 0x333   : > { %v791_v49 = vmul.f32 0.25, %v730_v48  ;;  %v809_v59 = vsel %vm687_vm4, %v793_v53, -inf }
 0x335   : > { %v803_v50 = vsel %vm687_vm4, %v791_v49, -inf }
 0x336   : > { %804 = vmax.xlane.f32.xlu0 %v803_v50 }
 0x338   : > { %v759_v52 = vpop.f32.mrf.mxu3 }
 0x339   : > { %v794_v54 = vmul.f32 0.25, %v759_v52 }
 0x33a   : > { %v732_v58 = vpop.f32.mrf.mxu0 }
 0x33b   : > { %v812_v56 = vsel %vm687_vm4, %v794_v54, -inf  ;;  %v792_v62 = vmul.f32 0.25, %v732_v58 }
 0x33c   : > { %813 = vmax.xlane.f32.xlu1 %v812_v56 }
 0x33d   : > { %v806_v2 = vsel %vm687_vm4, %v792_v62, -inf }
 0x33e   : > { %810 = vmax.xlane.f32.xlu0 %v809_v59 }
 0x344   : > { %807 = vmax.xlane.f32.xlu1 %v806_v2 }
 0x346   : > { %819 = vmax.xlane.f32.xlu0 %v818_v3  ;;  %v1774_v3 = vld [vmem:[%s2466_s5] sm:$0xff] }
 0x34c   : > { %849 = vadd.xlane.f32.xlu1 %v848_v6 }
 0x34e   : > { %846 = vadd.xlane.f32.xlu0 %v845_v7 }
 0x371   : > { %v817_v19 = vpop.xlane.xlu2 %816 }
 0x372   : > { %v827_v22 = vsub.f32 %v795_v44, %v817_v19 }
 0x374   : > { %v841_v27 = vmul.f32 1.442695, %v827_v22 }
 0x3a9   : > { %v805_v8 = vpop.xlane.xlu0 %804 }
 0x3aa   : > { %v823_v9 = vsub.f32 %v791_v49, %v805_v8 }
 0x3ac   : > { %v833_v10 = vmul.f32 1.442695, %v823_v9 }
 0x3ae   : > { %1892 = vpow2.f32 %v833_v10 }
 0x3af   : > { %v814_v11 = vpop.xlane.xlu1 %813 }
 0x3b0   : > { %v826_v12 = vsub.f32 %v794_v54, %v814_v11 }
 0x3b1   : > { %v811_v13 = vpop.xlane.xlu0 %810 }
 0x3b2   : > { %v839_v14 = vmul.f32 1.442695, %v826_v12  ;;  %v825_v15 = vsub.f32 %v793_v53, %v811_v13 }
 0x3b4   : > { %v1893_v16 = vpop.eup %1892  ;;  %1894 = vpow2.f32 %v839_v14  ;;  %v837_v17 = vmul.f32 1.442695, %v825_v15 }
 0x3b5   : > { %v851_v18 = vsel %vm687_vm4, %v1893_v16, 0.0 }
 0x3b6   : > { %1896 = vpow2.f32 %v837_v17  ;;  %852 = vadd.xlane.f32.xlu2 %v851_v18 }
 0x3b7   : > { %v808_v20 = vpop.xlane.xlu1 %807 }
 0x3b8   : > { %v824_v21 = vsub.f32 %v792_v62, %v808_v20 }
 0x3b9   : > { %v820_v23 = vpop.xlane.xlu0 %819 }
 0x3ba   : > { %v2235_v24 = vpop.eup %1894  ;;  %v835_v25 = vmul.f32 1.442695, %v824_v21  ;;  %v828_v33 = vsub.f32 %v796_v1, %v820_v23 }
 0x3bb   : > { %v860_v28 = vsel %vm687_vm4, %v2235_v24, 0.0 }
 0x3bc   : > { %v2237_v26 = vpop.eup %1896  ;;  %1898 = vpow2.f32 %v835_v25  ;;  %v843_v36 = vmul.f32 1.442695, %v828_v33 }
 0x3bd   : > { %v857_v29 = vsel %vm687_vm4, %v2237_v26, 0.0 }
 0x3be   : > { %861 = vadd.xlane.f32.xlu2 %v860_v28  ;;  %858 = vadd.xlane.f32.xlu1 %v857_v29 }
 0x3bf   : > { %v850_v30 = vpop.xlane.xlu1 %849 }
 0x3c0   : > { %1900 = vrcp.f32 %v850_v30 }
 0x3c1   : > { %1902 = vpow2.f32 %v841_v27  ;;  %v847_v31 = vpop.xlane.xlu0 %846 }
 0x3c2   : > { %v1899_v32 = vpop.eup %1898  ;;  %1904 = vrcp.f32 %v847_v31 }
 0x3c3   : > { %v854_v34 = vsel %vm687_vm4, %v1899_v32, 0.0  ;;  %1906 = vpow2.f32 %v843_v36 }
 0x3c4   : > { %855 = vadd.xlane.f32.xlu0 %v854_v34 }
 0x3c6   : > { %v1901_v35 = vpop.eup %1900 }
 0x3c7   : > { %v2244_v37 = vpop.eup %1902  ;;  %v878_v38 = vmul.f32 %v1901_v35, %v1889_v4 }
 0x3c8   : > { %v1905_v39 = vpop.eup %1904  ;;  %v863_v45 = vsel %vm687_vm4, %v2244_v37, 0.0 }
 0x3c9   : > { %v886_v40 = vpack.c.bf16 %v878_v38, %v878_v38  ;;  %v877_v43 = vmul.f32 %v1905_v39, %v1891_v5  ;;  %v1907_v49 = vpop.eup %1906 }
 0x3ca   : > { %v866_v50 = vsel %vm687_vm4, %v1907_v49, 0.0 }
 0x3cb   : > { %v885_v44 = vpack.c.bf16 %v877_v43, %v877_v43  ;;  %v904_v46 = vunpack.c.l.b16 %v886_v40 }
 0x3cc   : > { %864 = vadd.xlane.f32.xlu0 %v863_v45 }
 0x3cd   : > { %v903_v47 = vunpack.c.l.b16 %v885_v44 }
 0x3cf   : > { %v905_v48 = vpack.c.b16 %v904_v46, %v903_v47 }
 0x3d1   : > { %1636 = vmatmul.msk.bf16.vlgmr.msra.gmra.mxu2 %vm687_vm4, %v905_v48 }
 0x3d4   : > { %867 = vadd.xlane.f32.xlu0 %v866_v50 }
 0x3d6   : > { %1873 = vrot.lane.b32.xlu2 %v2211_v63, %s1998_s26  ;;  %s1802_s26 = sshll.u32 %s2104_s22, 4  ;;  %s1505_s22 = scalar_lea.sflag [#allocation3], %s485_s20 }
 0x3d7   : > { %1868 = vrot.lane.b32.xlu1 %v2211_v63, %s1997_s25  ;;  %s1586_s25 = sshll.u32 %s485_s20, 4  ;;  %s1516_s16 = scalar_lea.hbm %s2476_s15, %s1802_s26 }
 0x3d8   : > { %s487_s24 = scalar_lea.vmem [#allocation2], %s1586_s25  ;;  %s1519_s29 = sshll.u32 %s1516_s16, 4  ;;  %s1520_s29 = int_to_ptr.hbm [resolvable:$true] %s1519_s29 }
 0x3d9   : > { %s1517_s27 = sshll.u32 %s487_s24, 4  ;;  %s1518_s27 = int_to_ptr.vmem [resolvable:$true] %s1517_s27 }
 0x3e8   : > { %1878 = vrot.lane.b32.xlu0 %v2211_v63, %s1996_s23  ;;  %s1944_s23 = sshra.s32 %s1520_s29, 4  ;;  %s1945_s23 = int_to_ptr.hbm [resolvable:$true] %s1944_s23 }
 0x3e9   : > { %s1946_s30 = scalar_lea.hbm %s1945_s23, 16  ;;  %p1951_p0 = scmp.lt.s32.totalorder %s1945_s23, %s2476_s15 }
 0x3ea   : > { %p1947_p11 = scmp.ne.s32.totalorder %s1945_s23, %s1946_s30  ;;  %p1952_p1 = scmp.lt.s32.totalorder %s1950_s17, %s1946_s30 }
 0x3ec   : > { %p1948_p12 = pnand %p1947_p11, %p2121_p5  ;;  %p1953_p2 = por %p1952_p1, %p1951_p0 }
 0x3ee   : > { %p1949_p13 = pneg %p1948_p12 }
 0x3f0   : > { %p1954_p3 = pnand %p1953_p2, %p1949_p13 }
 0x429   : > { %v853_v51 = vpop.xlane.xlu2 %852 }
 0x42a   : > { %1908 = vrcp.f32 %v853_v51  ;;  %v1776_v51 = vld [vmem:[%s2466_s5 + $0x10] sm:$0xff] }
 0x430   : > { %v1909_v54 = vpop.eup %1908 }
 0x431   : > { %v862_v52 = vpop.xlane.xlu2 %861  ;;  %v859_v56 = vpop.xlane.xlu1 %858  ;;  %v879_v59 = vmul.f32 %v1909_v54, %v1893_v16 }
 0x433   : > { %v887_v2 = vpack.c.bf16 %v879_v59, %v879_v59 }
 0x435   : > { %v931_v8 = vunpack.c.l.b16 %v887_v2 }
 0x437   : > { %v856_v53 = vpop.xlane.xlu0 %855 }
 0x438   : > { %1910 = vrcp.f32 %v856_v53  ;;  %v1777_v53 = vld [vmem:[%s2466_s5 + $0x18] sm:$0xff] }
 0x439   : > { %v1874_v55 = vpop.permute.xlu2 %1873  ;;  %1912 = vrcp.f32 %v859_v56 }
 0x43a   : > { %v1876_v57 = vunpack.i.h.bf16 %v1874_v55  ;;  %v1875_v58 = vunpack.i.l.bf16 %v1874_v55  ;;  %1914 = vrcp.f32 %v862_v52 }
 0x43c   : > { %v896_v60 = vpack.c.bf16 %v1876_v57, %v1876_v57  ;;  %v895_v61 = vpack.c.bf16 %v1875_v58, %v1875_v58 }
 0x43e   : > { %v1911_v62 = vpop.eup %1910  ;;  %v937_v0 = vunpack.c.l.b16 %v896_v60  ;;  %v936_v1 = vunpack.c.l.b16 %v895_v61 }
 0x43f   : > { %v880_v63 = vmul.f32 %v1911_v62, %v1899_v32  ;;  %v865_v6 = vpop.xlane.xlu0 %864  ;;  %v1913_v7 = vpop.eup %1912 }
 0x440   : > { %v938_v4 = vpack.c.b16 %v937_v0, %v936_v1  ;;  %v1915_v10 = vpop.eup %1914  ;;  %v881_v12 = vmul.f32 %v1913_v7, %v2237_v26 }
 0x441   : > { %v888_v5 = vpack.c.bf16 %v880_v63, %v880_v63  ;;  %v882_v13 = vmul.f32 %v1915_v10, %v2235_v24 }
 0x442   : > { %950 = vmatpush.bf16.msra.mxu0 %v938_v4  ;;  %v889_v17 = vpack.c.bf16 %v881_v12, %v881_v12 }
 0x443   : > { %v932_v9 = vunpack.c.l.b16 %v888_v5  ;;  %v890_v18 = vpack.c.bf16 %v882_v13, %v882_v13 }
 0x444   : > { %v959_v25 = vunpack.c.l.b16 %v889_v17 }
 0x445   : > { %v933_v11 = vpack.c.b16 %v932_v9, %v931_v8  ;;  %v960_v27 = vunpack.c.l.b16 %v890_v18 }
 0x446   : > { %1058 = vmatpush.bf16.msrb.mxu0 %v1774_v3  ;;  %v1882_v3 = vld [vmem:[%s2467_s6] ss:$0 sm:$0xff] }
 0x447   : > { %1637 = vmatmul.msk.bf16.vlgmr.msra.gmra.mxu0 %vm687_vm4, %v933_v11  ;;  %v868_v19 = vpop.xlane.xlu0 %867  ;;  %v961_v26 = vpack.c.b16 %v960_v27, %v959_v25 }
 0x448   : > { %1916 = vrcp.f32 %v868_v19  ;;  %v2000_v19 = vmov 64.0  }
 0x449   : > { %v1869_v14 = vpop.permute.xlu1 %1868  ;;  %1918 = vrcp.f32 %v865_v6 }
 0x44a   : > { %v1871_v15 = vunpack.i.h.bf16 %v1869_v14  ;;  %v1870_v16 = vunpack.i.l.bf16 %v1869_v14  ;;  %1920 = vrcp.f32 %v2000_v19 }
 0x44c   : > { %v898_v20 = vpack.c.bf16 %v1871_v15, %v1871_v15  ;;  %v897_v21 = vpack.c.bf16 %v1870_v16, %v1870_v16 }
 0x44e   : > { %v965_v22 = vunpack.c.l.b16 %v898_v20  ;;  %v964_v23 = vunpack.c.l.b16 %v897_v21  ;;  %v1917_v29 = vpop.eup %1916 }
 0x44f   : > { %v1919_v30 = vpop.eup %1918  ;;  %v884_v31 = vmul.f32 %v1917_v29, %v1907_v49 }
 0x450   : > { %v966_v28 = vpack.c.b16 %v965_v22, %v964_v23  ;;  %v883_v32 = vmul.f32 %v1919_v30, %v2244_v37  ;;  %v1775_v37 = vld [vmem:[%s2466_s5 + $0x8] sm:$0xff]  ;;  %v1921_v20 = vpop.eup %1920 }
 0x451   : > { %v892_v36 = vpack.c.bf16 %v884_v31, %v884_v31  ;;  %1035 = vmatpush.bf16.msrb.mxu2 %v1775_v37  ;;  %v1138_v21 = vmul.f32 64.0, %v1921_v20  ;;  %vm1142_vm5 = vweird.f32 %v1921_v20  ;;  %v1780_v37 = vld [vmem:[%s2470_s9 + $0x14] sm:$0xf] }
 0x452   : > { %978 = vmatpush.bf16.msra.mxu3 %v966_v28  ;;  %v891_v44 = vpack.c.bf16 %v883_v32, %v883_v32 }
 0x453   : > { %v988_v47 = vunpack.c.l.b16 %v892_v36  ;;  %v1139_v22 = vsub.f32 1.0, %v1138_v21  ;;  %v1784_v36 = vld [vmem:[%s2470_s9 + $0x34] sm:$0xf]  ;;  %v1883_v21 = vld [vmem:[%s2468_s7] ss:$0 sm:$0xff] }
 0x454   : > { %v924_v24 = vpop.f32.mrf.mxu2  ;;  %v987_v50 = vunpack.c.l.b16 %v891_v44  ;;  %v1783_v44 = vld [vmem:[%s2470_s9 + $0x24] sm:$0xf0] }
 0x455   : > { %1638 = vmatmul.msk.bf16.vlgmr.msra.gmra.mxu3 %vm687_vm4, %v961_v26  ;;  %v1140_v23 = vmul.f32 %v1921_v20, %v1139_v22 }
 0x456   : > { %v989_v49 = vpack.c.b16 %v988_v47, %v987_v50  ;;  %1084 = vmatpush.bf16.msrb.mxu3 %v1776_v51  ;;  %v1680_v47 = vld [vmem:[%s2470_s9 + $0x28] sm:$0xf0]  ;;  %v1670_v50 = vld [vmem:[%s2470_s9 + $0x10] sm:$0xf] }
 0x457   : > { %v1141_v25 = vadd.f32 %v1921_v20, %v1140_v23 }
 0x45a   : > { %v1879_v33 = vpop.permute.xlu0 %1878 }
 0x45b   : > { %v1881_v34 = vunpack.i.h.bf16 %v1879_v33  ;;  %v1880_v35 = vunpack.i.l.bf16 %v1879_v33 }
 0x45c   : > { %v926_v38 = vpop.f32.mrf.mxu2 }
 0x45d   : > { %v900_v39 = vpack.c.bf16 %v1881_v34, %v1881_v34  ;;  %v899_v40 = vpack.c.bf16 %v1880_v35, %v1880_v35  ;;  %v1013_v43 = vpack.c.bf16 %v926_v38, %v924_v24  ;;  %v1686_v34 = vld [vmem:[%s2470_s9 + $0x30] sm:$0xf]  ;;  %v1785_v35 = vld [vmem:[%s2470_s9 + $0x34] sm:$0xf0] }
 0x45e   : > { %v1687_v38 = vor.u32 %v1785_v35, %v1686_v34  ;;  %v1789_v34 = vld [vmem:[%s2472_s11 + $0x18] sm:$0xff]  ;;  %v1795_v35 = vld [vmem:[%s2472_s11 + $0x48] sm:$0xff] }
 0x45f   : > { %v993_v45 = vunpack.c.l.b16 %v900_v39  ;;  %v992_v46 = vunpack.c.l.b16 %v899_v40  ;;  %1649 = vmatmul.msk.bf16.vlgmr.msrb.gmra.mxu0 %vm687_vm4, %v1013_v43  ;;  %v1688_v39 = vld [vmem:[%s2470_s9 + $0x38] sm:$0xf0]  ;;  %v1678_v43 = vld [vmem:[%s2470_s9 + $0x20] sm:$0xf] }
 0x460   : > { %v1691_v40 = vor.u32 %v1784_v36, %v1688_v39  ;;  %1254 = vmatpush.bf16.msra.mxu2 %v1687_v38  ;;  %v1788_v36 = vld [vmem:[%s2472_s11 + $0x10] sm:$0xff]  ;;  %v1794_v38 = vld [vmem:[%s2472_s11 + $0x40] sm:$0xff]  ;;  %v1787_v39 = vld [vmem:[%s2472_s11 + $0x8] sm:$0xff] }
 0x461   : > { %v994_v48 = vpack.c.b16 %v993_v45, %v992_v46  ;;  %v1782_v45 = vld [vmem:[%s2470_s9 + $0x24] sm:$0xf]  ;;  %v1679_v46 = vor.u32 %v1783_v44, %v1678_v43  ;;  %v1201_v43 = vld [vmem:[%s2471_s10] sm:$0x3] }
 0x462   : > { %1268 = vmatpush.bf16.msra.mxu0 %v1691_v40  ;;  %v1786_v40 = vld [vmem:[%s2472_s11] sm:$0xff] }
 0x463   : > { %1006 = vmatpush.bf16.msrb.mxu1 %v994_v48  ;;  %v1683_v48 = vor.u32 %v1782_v45, %v1680_v47  ;;  %v1204_v45 = vperm.slane %v1201_v43, 1 }
 0x464   : > { %1255 = vmatpush.bf16.msra.mxu2 %v1679_v46 }
 0x466   : > { %1639 = vmatmul.msk.bf16.vlgmr.msrb.gmra.mxu1 %vm687_vm4, %v989_v49  ;;  %1269 = vmatpush.bf16.msra.mxu0 %v1683_v48  ;;  %v1781_v49 = vld [vmem:[%s2470_s9 + $0x14] sm:$0xf0] }
 0x467   : > { %1112 = vmatpush.bf16.msra.mxu1 %v1777_v53  ;;  %v1671_v51 = vor.u32 %v1781_v49, %v1670_v50  ;;  %v1203_v50 = vperm.slane %v1201_v43, 0 }
 0x469   : > { %1256 = vmatpush.bf16.msra.mxu2 %v1671_v51 }
 0x4c4   : > { %v952_v52 = vpop.f32.mrf.mxu0 }
 0x4cc   : > { %v954_v54 = vpop.f32.mrf.mxu0 }
 0x4cd   : > { %v1016_v55 = vpack.c.bf16 %v954_v54, %v952_v52  ;;  %v1672_v52 = vld [vmem:[%s2470_s9 + $0x18] sm:$0xf0] }
 0x4ce   : > { %v1675_v54 = vor.u32 %v1780_v37, %v1672_v52 }
 0x4cf   : > { %1644 = vmatmul.msk.bf16.vlgmr.msrb.gmra.mxu2 %vm687_vm4, %v1016_v55 }
 0x4d0   : > { %1270 = vmatpush.bf16.msra.mxu0 %v1675_v54 }
 0x4d8   : > { %v980_v56 = vpop.f32.mrf.mxu3 }
 0x4dc   : > { %v1060_v0 = vpop.f32.mrf.mxu0 }
 0x4e0   : > { %v982_v57 = vpop.f32.mrf.mxu3 }
 0x4e1   : > { %v1065_v58 = vpack.c.bf16 %v982_v57, %v980_v56  ;;  %v1662_v56 = vld [vmem:[%s2470_s9] sm:$0xf]  ;;  %v1779_v57 = vld [vmem:[%s2470_s9 + $0x4] sm:$0xf0] }
 0x4e3   : > { %v1008_v59 = vpop.f32.mrf.mxu1  ;;  %1654 = vmatmul.msk.bf16.vlgmr.msrb.gmra.mxu3 %vm687_vm4, %v1065_v58  ;;  %v1778_v58 = vld [vmem:[%s2470_s9 + $0x4] sm:$0xf] }
 0x4e4   : > { %v1062_v8 = vpop.f32.mrf.mxu0 }
 0x4eb   : > { %v1010_v60 = vpop.f32.mrf.mxu1 }
 0x4ec   : > { %v1093_v61 = vpack.c.bf16 %v1010_v60, %v1008_v59  ;;  %v1663_v60 = vor.u32 %v1779_v57, %v1662_v56 }
 0x4ee   : > { %1659 = vmatmul.msk.bf16.vlgmr.msra.gmra.mxu1 %vm687_vm4, %v1093_v61  ;;  %v1664_v61 = vld [vmem:[%s2470_s9 + $0x8] sm:$0xf0]  ;;  %1257 = vmatpush.bf16.msra.mxu2 %v1663_v60 }
 0x552   : > { %v1037_v62 = vpop.f32.mrf.mxu2 }
 0x553   : > { %v1061_v2 = vadd.f32 %v1060_v0, %v1037_v62  ;;  %v1667_v62 = vor.u32 %v1778_v58, %v1664_v61  ;;  %v1801_v0 = vld [vmem:[%s2472_s11 + $0x78] sm:$0xff] }
 0x554   : > { %1430 = vmatpush.bf16.msrb.mxu1 %v1801_v0 }
 0x555   : > { %1271 = vmatpush.bf16.msra.mxu0 %v1667_v62 }
 0x55a   : > { %v1039_v6 = vpop.f32.mrf.mxu2 }
 0x55b   : > { %v1063_v10 = vadd.f32 %v1062_v8, %v1039_v6  ;;  %v1799_v8 = vld [vmem:[%s2472_s11 + $0x68] sm:$0xff] }
 0x566   : > { %v1086_v1 = vpop.f32.mrf.mxu3 }
 0x567   : > { %v1091_v63 = vadd.f32 %v1086_v1, %v1061_v2  ;;  %v1793_v1 = vld [vmem:[%s2472_s11 + $0x38] sm:$0xff] }
 0x568   : > { %1416 = vmatpush.bf16.msra.mxu3 %v1793_v1 }
 0x56b   : > { %v1114_v4 = vpop.f32.mrf.mxu1 }
 0x56c   : > { %v1119_v5 = vadd.f32 %v1114_v4, %v1091_v63  ;;  %v1792_v4 = vld [vmem:[%s2472_s11 + $0x30] sm:$0xff] }
 0x56d   : > { %1417 = vmatpush.bf16.msra.mxu3 %v1792_v4 }
 0x56e   : > { %v1125_v7 = vadd.f32 %v1882_v3, %v1119_v5  ;;  %v1088_v9 = vpop.f32.mrf.mxu3 }
 0x56f   : > { %v1092_v12 = vadd.f32 %v1088_v9, %v1063_v10  ;;  %v1791_v9 = vld [vmem:[%s2472_s11 + $0x28] sm:$0xff] }
 0x570   : > { %v1127_v11 = vadd.f32 %v1125_v7, %v2196_v41  ;;  %v2285_v41 = vsel %vm1142_vm5, %v1921_v20, %v1141_v25 }
 0x571   : > { %1418 = vmatpush.bf16.msra.mxu3 %v1791_v9 }
 0x572   : > { %v1131_v13 = vsel %vm600_vm3, %v1127_v11, 0.0 }
 0x573   : > { %v1116_v14 = vpop.f32.mrf.mxu1  ;;  %1132 = vadd.xlane.f32.xlu1 %v1131_v13 }
 0x574   : > { %v1120_v15 = vadd.f32 %v1116_v14, %v1092_v12  ;;  %v1798_v12 = vld [vmem:[%s2472_s11 + $0x60] sm:$0xff] }
 0x576   : > { %v1126_v16 = vadd.f32 %v1882_v3, %v1120_v15  ;;  %v1800_v3 = vld [vmem:[%s2472_s11 + $0x70] sm:$0xff] }
 0x577   : > { %1431 = vmatpush.bf16.msrb.mxu1 %v1800_v3 }
 0x578   : > { %v1128_v17 = vadd.f32 %v1126_v16, %v2198_v42 }
 0x57a   : > { %v1134_v18 = vsel %vm600_vm3, %v1128_v17, 0.0 }
 0x57b   : > { %1135 = vadd.xlane.f32.xlu2 %v1134_v18  ;;  %1432 = vmatpush.bf16.msrb.mxu1 %v1799_v8 }
 0x57f   : > { %1433 = vmatpush.bf16.msrb.mxu1 %v1798_v12 }
 0x5e6   : > { %v1133_v27 = vpop.xlane.xlu1 %1132 }
 0x5e7   : > { %v1144_v28 = vmul.f32 %v2285_v41, %v1133_v27  ;;  %v1884_v27 = vld [vmem:[%s2469_s8] ss:$0 sm:$0xff] }
 0x5e9   : > { %v2288_v26 = vsub.f32 %v1127_v11, %v1144_v28 }
 0x5eb   : > { %v1148_v42 = vmul.f32 %v2288_v26, %v2288_v26 }
 0x5ed   : > { %v1150_v24 = vsel %vm600_vm3, %v1148_v42, 0.0 }
 0x5ee   : > { %1151 = vadd.xlane.f32.xlu0 %v1150_v24  ;;  %v1136_v29 = vpop.xlane.xlu2 %1135 }
 0x5ef   : > { %v1145_v30 = vmul.f32 %v2285_v41, %v1136_v29 }
 0x5f1   : > { %v2294_v31 = vsub.f32 %v1128_v17, %v1145_v30 }
 0x5f3   : > { %v1149_v32 = vmul.f32 %v2294_v31, %v2294_v31 }
 0x5f5   : > { %v1153_v33 = vsel %vm600_vm3, %v1149_v32, 0.0 }
 0x5f6   : > { %1154 = vadd.xlane.f32.xlu1 %v1153_v33  ;;  %v1790_v33 = vld [vmem:[%s2472_s11 + $0x20] sm:$0xff] }
 0x5f7   : > { %1419 = vmatpush.bf16.msra.mxu3 %v1790_v33 }
 0x5fb   : > { %1420 = vmatpush.bf16.msra.mxu3 %v1789_v34 }
 0x5ff   : > { %1421 = vmatpush.bf16.msra.mxu3 %v1788_v36 }
 0x603   : > { %1422 = vmatpush.bf16.msra.mxu3 %v1787_v39 }
 0x607   : > { %1423 = vmatpush.bf16.msra.mxu3 %v1786_v40 }
 0x661   : > { %v1152_v53 = vpop.xlane.xlu0 %1151 }
 0x662   : > { %v1156_v55 = vmul.f32 %v1152_v53, %v2285_v41 }
 0x664   : > { %v1158_v59 = vadd.f32 1e-05, %v1156_v55 }
 0x666   : > { %1922 = vrsqrt.f32 %v1158_v59  ;;  %vm1166_vm7 = vweird.f32 %v1158_v59 }
 0x669   : > { %v1155_v2 = vpop.xlane.xlu1 %1154 }
 0x66a   : > { %v1157_v63 = vmul.f32 %v1155_v2, %v2285_v41 }
 0x66c   : > { %v1923_v5 = vpop.eup %1922  ;;  %v1159_v6 = vadd.f32 1e-05, %v1157_v63 }
 0x66d   : > { %v1161_v7 = vmul.f32 %v1923_v5, %v1158_v59  ;;  %vm1167_vm6 = vweird.f32 %v1923_v5  ;;  %v1885_v59 = vld [vmem:[%s2473_s12] ss:$0 sm:$0xff] }
 0x66e   : > { %1924 = vrsqrt.f32 %v1159_v6  ;;  %vm1168_vm8 = vmor %vm1166_vm7, %vm1167_vm6  ;;  %vm1176_vm10 = vweird.f32 %v1159_v6 }
 0x66f   : > { %v1162_v10 = vmul.f32 %v1923_v5, %v1161_v7 }
 0x671   : > { %v1163_v11 = vmul.f32 0.5, %v1162_v10 }
 0x673   : > { %v1164_v13 = vsub.f32 1.5, %v1163_v11 }
 0x674   : > { %v1925_v14 = vpop.eup %1924 }
 0x675   : > { %v1165_v15 = vmul.f32 %v1923_v5, %v1164_v13  ;;  %v1171_v16 = vmul.f32 %v1925_v14, %v1159_v6  ;;  %vm1177_vm9 = vweird.f32 %v1925_v14 }
 0x676   : > { %vm1178_vm11 = vmor %vm1176_vm10, %vm1177_vm9 }
 0x677   : > { %v1172_v17 = vmul.f32 %v1925_v14, %v1171_v16  ;;  %v1169_v18 = vsel %vm1168_vm8, %v1923_v5, %v1165_v15 }
 0x678   : > { %v1180_v22 = vmul.f32 %v1169_v18, %v2288_v26  ;;  %v1797_v26 = vld [vmem:[%s2472_s11 + $0x58] sm:$0xff] }
 0x679   : > { %v1173_v19 = vmul.f32 0.5, %v1172_v17  ;;  %1434 = vmatpush.bf16.msrb.mxu1 %v1797_v26  ;;  %v1886_v26 = vld [vmem:[%s2474_s13] ss:$0 sm:$0xff] }
 0x67a   : > { %v1185_v28 = vmul.f32 %v1883_v21, %v1180_v22 }
 0x67b   : > { %v1174_v20 = vsub.f32 1.5, %v1173_v19 }
 0x67c   : > { %v1190_v29 = vadd.f32 %v1884_v27, %v1185_v28 }
 0x67d   : > { %v1175_v23 = vmul.f32 %v1925_v14, %v1174_v20 }
 0x67f   : > { %v1179_v25 = vsel %vm1178_vm11, %v1925_v14, %v1175_v23 }
 0x680   : > { %v1181_v42 = vmul.f32 %v1179_v25, %v2294_v31  ;;  %v1796_v31 = vld [vmem:[%s2472_s11 + $0x50] sm:$0xff] }
 0x681   : > { %1435 = vmatpush.bf16.msrb.mxu1 %v1796_v31  ;;  %v1887_v31 = vld [vmem:[%s2475_s14] ss:$0 sm:$0xff] }
 0x682   : > { %v1186_v24 = vmul.f32 %v1883_v21, %v1181_v42 }
 0x684   : > { %v1191_v30 = vadd.f32 %v1884_v27, %v1186_v24 }
 0x685   : > { %1436 = vmatpush.bf16.msrb.mxu1 %v1795_v35 }
 0x686   : > { %v1192_v32 = vpack.c.bf16 %v1191_v30, %v1190_v29 }
 0x688   : > { %1692 = vmatmul.msk.bf16.vlgmr.msra.gmra.mxu2 %vm600_vm3, %v1192_v32  ;;  %1693 = vmatmul.msk.bf16.vlgmr.msra.gmra.mxu0 %vm600_vm3, %v1192_v32 }
 0x689   : > { %1437 = vmatpush.bf16.msrb.mxu1 %v1794_v38 }
 0x705   : > { %v1273_v44 = vpop.f32.mrf.mxu0 }
 0x706   : > { %v1274_v47 = vadd.f32 %v1273_v44, %v1204_v45 }
 0x708   : > { %v1279_v37 = vmax.f32 %v1274_v47, 0.0 }
 0x70b   : > { %v1259_v46 = vpop.f32.mrf.mxu2 }
 0x70c   : > { %v1260_v52 = vadd.f32 %v1259_v46, %v1203_v50 }
 0x70d   : > { %v1275_v48 = vpop.f32.mrf.mxu0 }
 0x70e   : > { %v1276_v49 = vadd.f32 %v1275_v48, %v1204_v45  ;;  %v1278_v56 = vmax.f32 %v1260_v52, 0.0 }
 0x710   : > { %v1281_v51 = vmax.f32 %v1276_v49, 0.0 }
 0x712   : > { %v1283_v53 = vpack.c.bf16 %v1281_v51, %v1279_v37 }
 0x713   : > { %v1261_v54 = vpop.f32.mrf.mxu2 }
 0x714   : > { %v1262_v55 = vadd.f32 %v1261_v54, %v1203_v50  ;;  %1438 = vmatmul.bf16.vlgmr.msrb.gmra.mxu1 %v1283_v53 }
 0x716   : > { %v1280_v57 = vmax.f32 %v1262_v55, 0.0 }
 0x718   : > { %v1282_v58 = vpack.c.bf16 %v1280_v57, %v1278_v56 }
 0x71a   : > { %1424 = vmatmul.bf16.vlgmr.msra.gmra.mxu3 %v1282_v58 }
 0x791   : > { %v1439_v60 = vpop.f32.mrf.mxu1 }
 0x799   : > { %v1441_v4 = vpop.f32.mrf.mxu1 }
 0x79d   : > { %v1425_v61 = vpop.f32.mrf.mxu3 }
 0x79e   : > { %v1426_v62 = vadd.f32 %v1885_v59, %v1425_v61 }
 0x7a0   : > { %v1440_v0 = vadd.f32 %v1439_v60, %v1426_v62 }
 0x7a2   : > { %v1444_v1 = vadd.f32 %v1440_v0, %v1190_v29 }
 0x7a4   : > { %v1448_v2 = vsel %vm600_vm3, %v1444_v1, 0.0 }
 0x7a5   : > { %v1427_v63 = vpop.f32.mrf.mxu3  ;;  %1449 = vadd.xlane.f32.xlu2 %v1448_v2 }
 0x7a6   : > { %v1428_v3 = vadd.f32 %v1885_v59, %v1427_v63 }
 0x7a8   : > { %v1442_v5 = vadd.f32 %v1441_v4, %v1428_v3 }
 0x7aa   : > { %v1445_v6 = vadd.f32 %v1442_v5, %v1191_v30 }
 0x7ac   : > { %v1451_v7 = vsel %vm600_vm3, %v1445_v6, 0.0 }
 0x7ad   : > { %1452 = vadd.xlane.f32.xlu1 %v1451_v7 }
 0x818   : > { %v1450_v8 = vpop.xlane.xlu2 %1449 }
 0x819   : > { %v1454_v9 = vmul.f32 %v1450_v8, %v2285_v41 }
 0x81b   : > { %v1456_v10 = vsub.f32 %v1444_v1, %v1454_v9 }
 0x81d   : > { %v1458_v11 = vmul.f32 %v1456_v10, %v1456_v10 }
 0x81f   : > { %v1460_v12 = vsel %vm600_vm3, %v1458_v11, 0.0 }
 0x820   : > { %v1453_v13 = vpop.xlane.xlu1 %1452  ;;  %1461 = vadd.xlane.f32.xlu2 %v1460_v12 }
 0x821   : > { %v1455_v14 = vmul.f32 %v1453_v13, %v2285_v41 }
 0x823   : > { %v1457_v15 = vsub.f32 %v1445_v6, %v1455_v14 }
 0x825   : > { %v1459_v16 = vmul.f32 %v1457_v15, %v1457_v15 }
 0x827   : > { %v1463_v17 = vsel %vm600_vm3, %v1459_v16, 0.0 }
 0x828   : > { %1464 = vadd.xlane.f32.xlu1 %v1463_v17 }
 0x893   : > { %v1462_v18 = vpop.xlane.xlu2 %1461 }
 0x894   : > { %v1466_v19 = vmul.f32 %v1462_v18, %v2285_v41 }
 0x896   : > { %v1468_v20 = vadd.f32 1e-05, %v1466_v19 }
 0x898   : > { %1926 = vrsqrt.f32 %v1468_v20  ;;  %vm1476_vm13 = vweird.f32 %v1468_v20 }
 0x89b   : > { %v1465_v21 = vpop.xlane.xlu1 %1464 }
 0x89c   : > { %v1467_v22 = vmul.f32 %v1465_v21, %v2285_v41 }
 0x89e   : > { %v1927_v23 = vpop.eup %1926  ;;  %v1469_v25 = vadd.f32 1e-05, %v1467_v22 }
 0x89f   : > { %v1471_v27 = vmul.f32 %v1927_v23, %v1468_v20  ;;  %vm1477_vm12 = vweird.f32 %v1927_v23 }
 0x8a0   : > { %1928 = vrsqrt.f32 %v1469_v25  ;;  %vm1478_vm14 = vmor %vm1476_vm13, %vm1477_vm12  ;;  %vm1486_vm0 = vweird.f32 %v1469_v25 }
 0x8a1   : > { %v1472_v28 = vmul.f32 %v1927_v23, %v1471_v27 }
 0x8a3   : > { %v1473_v42 = vmul.f32 0.5, %v1472_v28 }
 0x8a5   : > { %v1474_v24 = vsub.f32 1.5, %v1473_v42 }
 0x8a6   : > { %v1929_v29 = vpop.eup %1928 }
 0x8a7   : > { %v1475_v30 = vmul.f32 %v1927_v23, %v1474_v24  ;;  %v1481_v32 = vmul.f32 %v1929_v29, %v1469_v25  ;;  %vm1487_vm15 = vweird.f32 %v1929_v29 }
 0x8a8   : > { %vm1488_vm1 = vmor %vm1486_vm0, %vm1487_vm15 }
 0x8a9   : > { %v1479_v41 = vsel %vm1478_vm14, %v1927_v23, %v1475_v30  ;;  %v1482_v33 = vmul.f32 %v1929_v29, %v1481_v32 }
 0x8aa   : > { %v1490_v34 = vmul.f32 %v1479_v41, %v1456_v10 }
 0x8ab   : > { %v1483_v35 = vmul.f32 0.5, %v1482_v33 }
 0x8ac   : > { %v1495_v36 = vmul.f32 %v1886_v26, %v1490_v34 }
 0x8ad   : > { %v1484_v38 = vsub.f32 1.5, %v1483_v35 }
 0x8ae   : > { %v1500_v39 = vadd.f32 %v1887_v31, %v1495_v36 }
 0x8af   : > { %v1485_v40 = vmul.f32 %v1929_v29, %v1484_v38 }
 0x8b0   : > { %1502 = vst.msk [vmem:[%s487_s24] sm:$0xff] %vm600_vm3, %v1500_v39 }
 0x8b1   : > { %v1489_v43 = vsel %vm1488_vm1, %v1929_v29, %v1485_v40 }
 0x8b2   : > { %v1491_v44 = vmul.f32 %v1489_v43, %v1457_v15 }
 0x8b4   : > { %v1496_v45 = vmul.f32 %v1886_v26, %v1491_v44 }
 0x8b6   : > { %v1501_v46 = vadd.f32 %v1887_v31, %v1496_v45 }
 0x8b8   : > { %1503 = vst.msk [vmem:[%s487_s24 + $0x8] sm:$0xff] %vm600_vm3, %v1501_v46 }
 0x8b9   : > { %1957 = shalt.err (!%p1954_p3)
}
 0x8ba   : > { %s2001_s20 = smov 128   ;;  %s2002_s24 = smov 8  }
 0x8bb   : > { %1803 = dma.vmem_to_hbm [thread:$0]  (%p2121_p5), %s1518_s27, 256, %s1520_s29, %s1505_s22, %s2001_s20, %s2001_s20, %s2002_s24  }
 0x8bc PF: > { %p1809_p4 = scmp.ge.s32.totalorder %s1992_s21, 2  ;;  %s1534_s25 = sand.u32 1, %s1980_s18  }
 0x8bd   : > { %s1535_s0 = scalar_lea.sflag [#allocation3], %s1534_s25 }
 0x8be   : > { %p1806_p7 = pnand %p1809_p4, %p2125_p6 }
 0x8c0   : > { %p1807_p8 = pneg %p1806_p7 }
 0x8c2   : > { %1975 = dma.done.wait (%p1807_p8), %s1535_s0, 256  }
 0x8c3   : > { %1977 = vsyncadd (%p1807_p8), %s1535_s0, 4294967040  ;;  %s2492_s21 = sld [smem:[#allocation6_spill]]  ;;  %s2495_s18 = smov %s1984_s19 }
 0x8c4   : > { %s2493_s23 = sld [smem:[#allocation5_spill]] }
 0x8c5   : > { %s2494_s20 = sld [smem:[#allocation7_spill]] }
 0x8c9   : > { %p25_p9 = scmp.ge.s32.totalorder %s2492_s21, 4  }
 0x8ca   : > { %s2496_s19 = smov %s2493_s23 }
 0x8cb   :  { %27 = sbr.rel (!%p25_p9) target bundleno = 6 (0x6), region = 115 }
 0x8d0   :  { %1541 = vsyncpa [#allocation3], 1 }
 0x8d1   :  { %1543 = vsyncpa [#allocation3 + $0x1], 1 }

</bundles_post_ra>
